<compile_context>
chip_gen: v5e
topology: v5e:2x2
jax: 0.10.0
libtpu: 0.0.40
codegen_flags: <defaults>
</compile_context>

<pallas_src>
import functools
import math
import random

import jax
import jax.numpy as jnp
from jax.experimental import pallas as pl
from jax.experimental.pallas import tpu as pltpu

_LP = 128  # lane-tile width; each of Q/K/V lives in its own 128-lane block


def _attn_kernel(x_ref, w_tok_ref, w_qkv_ref, w_o_ref, consts_ref, qkv_int_ref,
                 mask_ref, out_ref, attn_ref, qkv_sc,
                 *, tb, seq_len, p, hidden_dim, scale):
    H = hidden_dim
    S = seq_len
    extra = p - S
    d_in = x_ref.shape[-1]

    consts = consts_ref[...]                       # (S, 5*128), 128-lane-aligned slabs
    mod = consts[:, :_LP]                          # modulation (lanes >= H are zero)
    add_qkv = consts[:, _LP:4 * _LP]               # per-position additive Q|K|V term
    b_o = consts[:, 4 * _LP:4 * _LP + H]           # out-proj bias rows          (S, H)

    # --- interp-token Q/K/V rows (batch-invariant, precomputed in the wrapper) ---
    # Rewritten every step so the scratch is valid on every core under megacore.
    qkv_sc[:, S:, :] = jnp.broadcast_to(qkv_int_ref[...][None], (tb, extra, 3 * _LP))

    # --- token projection + modulation for the S real rows ---
    x_flat = x_ref[...].reshape(tb * S, d_in)
    t = jnp.dot(x_flat, w_tok_ref[...], preferred_element_type=jnp.float32)  # (tb*S,128)
    t = t.reshape(tb, S, _LP) * mod[None]

    # --- fused Q/K/V projection (overridden K/V columns zeroed in the wrapper) ---
    qkv = jnp.dot(t.reshape(tb * S, _LP), w_qkv_ref[...],
                  preferred_element_type=jnp.float32)                        # (tb*S,384)
    qkv_sc[:, :S, :] = qkv.reshape(tb, S, 3 * _LP) + add_qkv[None]

    # Flatten all tb*p rows for single fat MXU issues; Q/K/V slices are
    # whole 128-lane tiles (free views).
    qkv_full = qkv_sc[...].reshape(tb * p, 3 * _LP)
    q = qkv_full[:, :_LP]
    k = qkv_full[:, _LP:2 * _LP]
    v = qkv_full[:, 2 * _LP:]

    # --- one flattened score matmul + block-diagonal mask (-1e30 off-block) ---
    scores = jax.lax.dot_general(q, k, (((1,), (1,)), ((), ())),
                                 preferred_element_type=jnp.float32)
    scores = scores * scale + mask_ref[...]
    m = jnp.max(scores, axis=-1, keepdims=True)
    e = jnp.exp(scores - m)                        # off-block entries underflow to 0
    denom = jnp.sum(e, axis=-1, keepdims=True)
    r = pl.reciprocal(denom, approx=True)          # EUP vrcp ...
    r = r * (2.0 - denom * r)                      # ... + one Newton step (~f32 exact)
    w = e * r                                      # (tb*p, tb*p), exact 0 off-block

    # attention-weights output: extract the tb diagonal (p, p) blocks
    for b in range(tb):
        attn_ref[b] = w[b * p:(b + 1) * p, b * p:(b + 1) * p]

    # --- PV + output projection as flat matmuls (off-block weights are 0) ---
    attn_out = jnp.dot(w, v, preferred_element_type=jnp.float32)             # (tb*p,128)
    out = jnp.dot(attn_out, w_o_ref[...], preferred_element_type=jnp.float32)  # (tb*p,H)
    out_ref[...] = out.reshape(tb, p, H)[:, :S, :] + b_o[None]


def _pad_lanes(a, width=_LP):
    return jnp.pad(a, ((0, 0), (0, width - a.shape[-1])))


def _prepare_inputs(params, *, seq_len, p, hidden_dim, v_idx):
    """Fold biases / overrides into packed, batch-invariant, 128-lane-aligned inputs."""
    (w_tok, b_tok, mod, interp, w_q, b_q, w_k, b_k, w_v, b_v, w_o, b_o,
     k_over, v_over) = params
    H = hidden_dim
    S = seq_len

    # Zero the manually-overridden output columns (the override fully replaces them).
    w_k_m = w_k.at[:, H - 1].set(0.0)
    b_k_m = b_k.at[:, H - 1].set(0.0)
    w_v_m = w_v.at[:, v_idx].set(0.0)
    b_v_m = b_v.at[:, v_idx].set(0.0)

    # Fused QKV weight: each projection in its own 128-lane block, rows padded to 128.
    w_qkv = jnp.concatenate(
        [_pad_lanes(w_q), _pad_lanes(w_k_m), _pad_lanes(w_v_m)], axis=1)     # (H, 384)
    w_qkv = jnp.pad(w_qkv, ((0, _LP - H), (0, 0)))                           # (128, 384)

    w_tok_pad = _pad_lanes(w_tok)                                            # (D_in, 128)
    w_o_pad = jnp.pad(w_o, ((0, _LP - H), (0, 0)))                           # (128, H)

    # Per-position additive slab for the S real rows:
    #   (b_tok*mod) @ W + b + override one-hots, per projection, 128-lane padded.
    onehot_k = jnp.zeros((1, H), jnp.float32).at[0, H - 1].set(1.0)
    onehot_v = jnp.zeros((1, H), jnp.float32).at[0, v_idx].set(1.0)
    bt_mod = b_tok * mod                                                     # (S, H)
    add_q = bt_mod @ w_q + b_q
    add_k = bt_mod @ w_k_m + b_k_m + k_over[:S] * onehot_k
    add_v = bt_mod @ w_v_m + b_v_m + v_over[:S] * onehot_v
    add_qkv = jnp.concatenate(
        [_pad_lanes(add_q), _pad_lanes(add_k), _pad_lanes(add_v)], axis=1)   # (S, 384)

    consts = jnp.concatenate(
        [_pad_lanes(mod), add_qkv,
         _pad_lanes(jnp.broadcast_to(b_o, (S, H)))], axis=1)                 # (S, 640)

    # Batch-invariant interp-token Q/K/V rows, overrides applied, 128-lane padded.
    q_int = interp @ w_q + b_q
    k_int = (interp @ w_k + b_k).at[:, H - 1].set(k_over[S:, 0])
    v_int = (interp @ w_v + b_v).at[:, v_idx].set(v_over[S:, 0])
    qkv_int = jnp.concatenate(
        [_pad_lanes(q_int), _pad_lanes(k_int), _pad_lanes(v_int)], axis=1)   # (extra, 384)

    return w_tok_pad, w_qkv, w_o_pad, consts, qkv_int


def _block_diag_mask(tb, p):
    g = jnp.arange(tb * p, dtype=jnp.int32) // p
    return jnp.where(g[:, None] == g[None, :], 0.0, -1e30).astype(jnp.float32)


def _default_block_b(batch):
    kind = ""
    try:
        kind = jax.devices()[0].device_kind.lower()
    except Exception:
        pass
    # v7x has 2 TensorCores/chip: keep the grid even so both get a step.
    if ("v7" in kind or "7x" in kind) and batch % 2 == 0:
        return batch // 2
    # v5e / v6e: single TensorCore -> one grid step, max MXU row fill.
    return batch


def one_layer_attention_kv(x, params, *, seq_len, p, hidden_dim, beta, v_idx,
                           block_b=None):
    B, S, D_in = x.shape
    assert S == seq_len
    H = hidden_dim
    extra = p - S
    assert extra >= 1
    if block_b is None:
        block_b = _default_block_b(B)
    assert B % block_b == 0

    w_tok, w_qkv, w_o, consts, qkv_int = _prepare_inputs(
        params, seq_len=seq_len, p=p, hidden_dim=hidden_dim, v_idx=v_idx)
    mask = _block_diag_mask(block_b, p)
    scale = beta / math.sqrt(H)

    def full_spec(shape):
        return pl.BlockSpec(shape, lambda b: (0,) * len(shape))

    in_specs = [
        pl.BlockSpec((block_b, S, D_in), lambda b: (b, 0, 0)),   # x (batch-tiled)
        full_spec((D_in, _LP)),                                  # w_tok (lane-padded)
        full_spec((_LP, 3 * _LP)),                               # fused w_qkv
        full_spec((_LP, H)),                                     # w_o
        full_spec((S, 5 * _LP)),                                 # packed per-pos consts
        full_spec((extra, 3 * _LP)),                             # interp-token QKV rows
        full_spec((block_b * p, block_b * p)),                   # block-diagonal mask
    ]
    out_specs = [
        pl.BlockSpec((block_b, S, H), lambda b: (b, 0, 0)),
        pl.BlockSpec((block_b, p, p), lambda b: (b, 0, 0)),
    ]
    out_shape = (
        jax.ShapeDtypeStruct((B, S, H), jnp.float32),
        jax.ShapeDtypeStruct((B, p, p), jnp.float32),
    )

    kernel = functools.partial(
        _attn_kernel, tb=block_b, seq_len=seq_len, p=p, hidden_dim=H, scale=scale)

    return pl.pallas_call(
        kernel,
        out_shape=out_shape,
        grid_spec=pltpu.PrefetchScalarGridSpec(
            num_scalar_prefetch=0,
            grid=(B // block_b,),
            in_specs=in_specs,
            out_specs=out_specs,
            scratch_shapes=[pltpu.VMEM((block_b, p, 3 * _LP), jnp.float32)],
        ),
        compiler_params=pltpu.CompilerParams(
            dimension_semantics=("parallel",)),
    )(x, w_tok, w_qkv, w_o, consts, qkv_int, mask)


def reference(x, params, *, seq_len, p, hidden_dim, beta, v_idx):
    (w_tok, b_tok, mod, interp, w_q, b_q, w_k, b_k, w_v, b_v, w_o, b_o,
     k_over, v_over) = params
    B = x.shape[0]
    tok = x @ w_tok + b_tok
    tok = tok * mod[None]
    interp_b = jnp.broadcast_to(interp[None], (B,) + interp.shape)
    xm = jnp.concatenate([tok, interp_b], axis=1)
    Q = xm @ w_q + b_q
    K = xm @ w_k + b_k
    V = xm @ w_v + b_v
    K = K.at[:, :, -1].set(k_over[:, 0][None])
    V = V.at[:, :, v_idx].set(v_over[:, 0][None])
    scores = jnp.einsum("bqh,bkh->bqk", Q, K) / math.sqrt(hidden_dim) * beta
    w = jax.nn.softmax(scores, axis=-1)
    out = jnp.einsum("bqk,bkh->bqh", w, V) @ w_o + b_o
    return out[:, :seq_len, :], w


if __name__ == "__main__":
    # Small shapes consistent with the module's forward.
    batch, seq_len, p = 8, 8, 16
    input_dim, hidden_dim = 8, 32
    a, b, beta, t_val = -25.0, 25.0, 25.0, 1.0
    extra = p - seq_len

    # Deterministic v_override_index (module uses random.randint at init).
    random.seed(0)
    v_idx = random.randint(0, hidden_dim - 1)

    key = jax.random.PRNGKey(0)
    ks = jax.random.split(key, 16)

    def linear(kw, kb, fan_in, fan_out):
        bound = 1.0 / math.sqrt(fan_in)
        W = jax.random.uniform(kw, (fan_in, fan_out), jnp.float32, -bound, bound)
        bvec = jax.random.uniform(kb, (1, fan_out), jnp.float32, -bound, bound)
        return W, bvec

    w_tok, b_tok = linear(ks[0], ks[1], input_dim, hidden_dim)
    # Learnable parameter (init = ones in the module); perturb to exercise the path.
    modulation = 1.0 + 0.1 * jax.random.normal(ks[11], (seq_len, hidden_dim), jnp.float32)
    interp_tokens = jnp.broadcast_to(
        jnp.linspace(-1.0, 1.0, extra, dtype=jnp.float32)[:, None],
        (extra, hidden_dim)).astype(jnp.float32)
    w_q, b_q = linear(ks[2], ks[3], hidden_dim, hidden_dim)
    w_k, b_k = linear(ks[4], ks[5], hidden_dim, hidden_dim)
    w_v, b_v = linear(ks[6], ks[7], hidden_dim, hidden_dim)
    w_o, b_o = linear(ks[8], ks[9], hidden_dim, hidden_dim)

    # Buffers / derived override values (same as the PyTorch forward).
    interp_full = jnp.linspace(a, b, p, dtype=jnp.float32)            # (p,)
    k_range = jnp.arange(p, dtype=jnp.float32)
    k_over = (k_range * (interp_full + interp_full[0]) - 2.0 * k_range * t_val)[:, None]
    v_over = interp_full[:, None]                                     # (p, 1)

    params = (w_tok, b_tok, modulation, interp_tokens,
              w_q, b_q, w_k, b_k, w_v, b_v, w_o, b_o, k_over, v_over)

    x = jax.random.normal(ks[10], (batch, seq_len, input_dim), jnp.float32)

    out, attn = one_layer_attention_kv(
        x, params, seq_len=seq_len, p=p, hidden_dim=hidden_dim,
        beta=beta, v_idx=v_idx, block_b=None)        # auto: grid=1 (v5e/v6e), 2 (v7x)
    jax.block_until_ready((out, attn))

    out_ref, attn_ref = reference(
        x, params, seq_len=seq_len, p=p, hidden_dim=hidden_dim, beta=beta, v_idx=v_idx)

    assert out.shape == (batch, seq_len, hidden_dim)
    assert attn.shape == (batch, p, p)
    # Bias folding still reorders a few fp adds; keep the slightly relaxed atol.
    assert jnp.allclose(attn, attn_ref, rtol=1e-4, atol=5e-4)
    assert jnp.allclose(out, out_ref, rtol=1e-4, atol=5e-4)

    print("KERNEL_OK")
</pallas_src>

<mosaic_0001>
module attributes {stable_mosaic.version = 11 : i64} {
  func.func @_attn_kernel(%arg0: i32, %arg1: memref<8x8x8xf32, #tpu.memory_space<vmem>>, %arg2: memref<8x128xf32, #tpu.memory_space<vmem>>, %arg3: memref<128x384xf32, #tpu.memory_space<vmem>>, %arg4: memref<128x32xf32, #tpu.memory_space<vmem>>, %arg5: memref<8x640xf32, #tpu.memory_space<vmem>>, %arg6: memref<8x384xf32, #tpu.memory_space<vmem>>, %arg7: memref<128x128xf32, #tpu.memory_space<vmem>>, %arg8: memref<8x8x32xf32, #tpu.memory_space<vmem>>, %arg9: memref<8x16x16xf32, #tpu.memory_space<vmem>>, %arg10: memref<8x16x384xf32, #tpu.memory_space<vmem>>) attributes {dimension_semantics = [#tpu.dimension_semantics<parallel>], iteration_bounds = array<i64: 1>, scalar_prefetch = 0 : i64, scratch_operands = 1 : i64, tpu.core_type = #tpu.core_type<tc>, window_params = [{transform_indices = @transform_0, window_bounds = array<i64: 8, 8, 8>}, {pipeline_mode = #tpu.pipeline_mode<synchronous>, transform_indices = @transform_1, window_bounds = array<i64: 8, 128>}, {pipeline_mode = #tpu.pipeline_mode<synchronous>, transform_indices = @transform_2, window_bounds = array<i64: 128, 384>}, {pipeline_mode = #tpu.pipeline_mode<synchronous>, transform_indices = @transform_3, window_bounds = array<i64: 128, 32>}, {pipeline_mode = #tpu.pipeline_mode<synchronous>, transform_indices = @transform_4, window_bounds = array<i64: 8, 640>}, {pipeline_mode = #tpu.pipeline_mode<synchronous>, transform_indices = @transform_5, window_bounds = array<i64: 8, 384>}, {pipeline_mode = #tpu.pipeline_mode<synchronous>, transform_indices = @transform_6, window_bounds = array<i64: 128, 128>}, {transform_indices = @transform_7, window_bounds = array<i64: 8, 8, 32>}, {transform_indices = @transform_8, window_bounds = array<i64: 8, 16, 16>}]} {
    %c0 = arith.constant 0 : index
    %c0_0 = arith.constant 0 : index
    %0 = vector.load %arg5[%c0, %c0_0] : memref<8x640xf32, #tpu.memory_space<vmem>>, vector<8x640xf32>
    %1 = vector.extract_strided_slice %0 {offsets = [0, 0], sizes = [8, 128], strides = [1, 1]} : vector<8x640xf32> to vector<8x128xf32>
    %2 = vector.extract_strided_slice %0 {offsets = [0, 128], sizes = [8, 384], strides = [1, 1]} : vector<8x640xf32> to vector<8x384xf32>
    %3 = vector.extract_strided_slice %0 {offsets = [0, 512], sizes = [8, 32], strides = [1, 1]} : vector<8x640xf32> to vector<8x32xf32>
    %c0_1 = arith.constant 0 : index
    %c0_2 = arith.constant 0 : index
    %4 = vector.load %arg6[%c0_1, %c0_2] : memref<8x384xf32, #tpu.memory_space<vmem>>, vector<8x384xf32>
    %5 = vector.shape_cast %4 : vector<8x384xf32> to vector<1x8x384xf32>
    %6 = vector.shape_cast %5 : vector<1x8x384xf32> to vector<1x8x384xf32>
    %7 = vector.broadcast %6 : vector<1x8x384xf32> to vector<8x8x384xf32>
    %c0_3 = arith.constant 0 : index
    %c8 = arith.constant 8 : index
    %c0_4 = arith.constant 0 : index
    %8 = vector.load %arg10[%c0_3, %c8, %c0_4] : memref<8x16x384xf32, #tpu.memory_space<vmem>>, vector<8x8x384xf32>
    tpu.vector_store %arg10[%c0_3, %c8, %c0_4], %7 {strides = array<i32>} : memref<8x16x384xf32, #tpu.memory_space<vmem>>, vector<8x8x384xf32>,
    %c0_5 = arith.constant 0 : index
    %c0_6 = arith.constant 0 : index
    %c0_7 = arith.constant 0 : index
    %9 = vector.load %arg1[%c0_5, %c0_6, %c0_7] : memref<8x8x8xf32, #tpu.memory_space<vmem>>, vector<8x8x8xf32>
    %10 = vector.shape_cast %9 : vector<8x8x8xf32> to vector<64x8xf32>
    %c0_8 = arith.constant 0 : index
    %c0_9 = arith.constant 0 : index
    %11 = vector.load %arg2[%c0_8, %c0_9] : memref<8x128xf32, #tpu.memory_space<vmem>>, vector<8x128xf32>
    %cst = arith.constant dense<0.000000e+00> : vector<64x128xf32>
    %12 = tpu.matmul %10, %11, %cst {dimension_numbers = #tpu.dot_dimension_numbers<[1], [0], [0], [1], [0, 0, 1, 1], [], []>} : vector<64x8xf32>, vector<8x128xf32>, vector<64x128xf32> -> vector<64x128xf32>
    %13 = vector.shape_cast %12 : vector<64x128xf32> to vector<8x8x128xf32>
    %14 = vector.shape_cast %1 : vector<8x128xf32> to vector<1x8x128xf32>
    %15 = vector.broadcast %14 : vector<1x8x128xf32> to vector<8x8x128xf32>
    %16 = arith.mulf %13, %15 : vector<8x8x128xf32>
    %17 = vector.shape_cast %16 : vector<8x8x128xf32> to vector<64x128xf32>
    %c0_10 = arith.constant 0 : index
    %c0_11 = arith.constant 0 : index
    %18 = vector.load %arg3[%c0_10, %c0_11] : memref<128x384xf32, #tpu.memory_space<vmem>>, vector<128x384xf32>
    %cst_12 = arith.constant dense<0.000000e+00> : vector<64x384xf32>
    %19 = tpu.matmul %17, %18, %cst_12 {dimension_numbers = #tpu.dot_dimension_numbers<[1], [0], [0], [1], [0, 0, 1, 1], [], []>} : vector<64x128xf32>, vector<128x384xf32>, vector<64x384xf32> -> vector<64x384xf32>
    %20 = vector.shape_cast %19 : vector<64x384xf32> to vector<8x8x384xf32>
    %21 = vector.shape_cast %2 : vector<8x384xf32> to vector<1x8x384xf32>
    %22 = vector.broadcast %21 : vector<1x8x384xf32> to vector<8x8x384xf32>
    %23 = arith.addf %20, %22 : vector<8x8x384xf32>
    %c0_13 = arith.constant 0 : index
    %c0_14 = arith.constant 0 : index
    %c0_15 = arith.constant 0 : index
    %24 = vector.load %arg10[%c0_13, %c0_14, %c0_15] : memref<8x16x384xf32, #tpu.memory_space<vmem>>, vector<8x8x384xf32>
    tpu.vector_store %arg10[%c0_13, %c0_14, %c0_15], %23 {strides = array<i32>} : memref<8x16x384xf32, #tpu.memory_space<vmem>>, vector<8x8x384xf32>,
    %c0_16 = arith.constant 0 : index
    %c0_17 = arith.constant 0 : index
    %c0_18 = arith.constant 0 : index
    %25 = vector.load %arg10[%c0_16, %c0_17, %c0_18] : memref<8x16x384xf32, #tpu.memory_space<vmem>>, vector<8x16x384xf32>
    %26 = vector.shape_cast %25 : vector<8x16x384xf32> to vector<128x384xf32>
    %27 = vector.extract_strided_slice %26 {offsets = [0, 0], sizes = [128, 128], strides = [1, 1]} : vector<128x384xf32> to vector<128x128xf32>
    %28 = vector.extract_strided_slice %26 {offsets = [0, 128], sizes = [128, 128], strides = [1, 1]} : vector<128x384xf32> to vector<128x128xf32>
    %29 = vector.extract_strided_slice %26 {offsets = [0, 256], sizes = [128, 128], strides = [1, 1]} : vector<128x384xf32> to vector<128x128xf32>
    %cst_19 = arith.constant dense<0.000000e+00> : vector<128x128xf32>
    %30 = tpu.matmul %27, %28, %cst_19 {dimension_numbers = #tpu.dot_dimension_numbers<[1], [1], [0], [0], [0, 0, 1, 0], [], []>} : vector<128x128xf32>, vector<128x128xf32>, vector<128x128xf32> -> vector<128x128xf32>
    %cst_20 = arith.constant 4.41941738 : f32
    %31 = vector.broadcast %cst_20 : f32 to vector<128x128xf32>
    %32 = arith.mulf %30, %31 : vector<128x128xf32>
    %c0_21 = arith.constant 0 : index
    %c0_22 = arith.constant 0 : index
    %33 = vector.load %arg7[%c0_21, %c0_22] : memref<128x128xf32, #tpu.memory_space<vmem>>, vector<128x128xf32>
    %34 = arith.addf %32, %33 : vector<128x128xf32>
    %cst_23 = arith.constant dense<0xFF800000> : vector<128xf32>
    %35 = vector.multi_reduction <maximumf>, %34, %cst_23 [1] : vector<128x128xf32> to vector<128xf32>
    %36 = vector.shape_cast %35 : vector<128xf32> to vector<128x1xf32>
    %37 = vector.broadcast %36 : vector<128x1xf32> to vector<128x128xf32>
    %38 = arith.subf %34, %37 : vector<128x128xf32>
    %39 = math.exp %38 : vector<128x128xf32>
    %cst_24 = arith.constant dense<0.000000e+00> : vector<128xf32>
    %40 = vector.multi_reduction <add>, %39, %cst_24 [1] : vector<128x128xf32> to vector<128xf32>
    %41 = vector.shape_cast %40 : vector<128xf32> to vector<128x1xf32>
    %42 = tpu.reciprocal %41 {approx = true} : vector<128x1xf32> -> vector<128x1xf32>
    %43 = arith.mulf %41, %42 : vector<128x1xf32>
    %cst_25 = arith.constant 2.000000e+00 : f32
    %44 = vector.broadcast %cst_25 : f32 to vector<128x1xf32>
    %45 = arith.subf %44, %43 : vector<128x1xf32>
    %46 = arith.mulf %42, %45 : vector<128x1xf32>
    %47 = vector.broadcast %46 : vector<128x1xf32> to vector<128x128xf32>
    %48 = arith.mulf %39, %47 : vector<128x128xf32>
    %49 = vector.extract_strided_slice %48 {offsets = [0, 0], sizes = [16, 16], strides = [1, 1]} : vector<128x128xf32> to vector<16x16xf32>
    %c0_26 = arith.constant 0 : index
    %c0_27 = arith.constant 0 : index
    %c0_28 = arith.constant 0 : index
    %50 = vector.load %arg9[%c0_26, %c0_27, %c0_28] : memref<8x16x16xf32, #tpu.memory_space<vmem>>, vector<1x16x16xf32>
    %51 = vector.shape_cast %50 : vector<1x16x16xf32> to vector<16x16xf32>
    %52 = vector.shape_cast %49 : vector<16x16xf32> to vector<1x16x16xf32>
    tpu.vector_store %arg9[%c0_26, %c0_27, %c0_28], %52 {strides = array<i32>} : memref<8x16x16xf32, #tpu.memory_space<vmem>>, vector<1x16x16xf32>,
    %53 = vector.extract_strided_slice %48 {offsets = [16, 16], sizes = [16, 16], strides = [1, 1]} : vector<128x128xf32> to vector<16x16xf32>
    %c1 = arith.constant 1 : index
    %c0_29 = arith.constant 0 : index
    %c0_30 = arith.constant 0 : index
    %54 = vector.load %arg9[%c1, %c0_29, %c0_30] : memref<8x16x16xf32, #tpu.memory_space<vmem>>, vector<1x16x16xf32>
    %55 = vector.shape_cast %54 : vector<1x16x16xf32> to vector<16x16xf32>
    %56 = vector.shape_cast %53 : vector<16x16xf32> to vector<1x16x16xf32>
    tpu.vector_store %arg9[%c1, %c0_29, %c0_30], %56 {strides = array<i32>} : memref<8x16x16xf32, #tpu.memory_space<vmem>>, vector<1x16x16xf32>,
    %57 = vector.extract_strided_slice %48 {offsets = [32, 32], sizes = [16, 16], strides = [1, 1]} : vector<128x128xf32> to vector<16x16xf32>
    %c2 = arith.constant 2 : index
    %c0_31 = arith.constant 0 : index
    %c0_32 = arith.constant 0 : index
    %58 = vector.load %arg9[%c2, %c0_31, %c0_32] : memref<8x16x16xf32, #tpu.memory_space<vmem>>, vector<1x16x16xf32>
    %59 = vector.shape_cast %58 : vector<1x16x16xf32> to vector<16x16xf32>
    %60 = vector.shape_cast %57 : vector<16x16xf32> to vector<1x16x16xf32>
    tpu.vector_store %arg9[%c2, %c0_31, %c0_32], %60 {strides = array<i32>} : memref<8x16x16xf32, #tpu.memory_space<vmem>>, vector<1x16x16xf32>,
    %61 = vector.extract_strided_slice %48 {offsets = [48, 48], sizes = [16, 16], strides = [1, 1]} : vector<128x128xf32> to vector<16x16xf32>
    %c3 = arith.constant 3 : index
    %c0_33 = arith.constant 0 : index
    %c0_34 = arith.constant 0 : index
    %62 = vector.load %arg9[%c3, %c0_33, %c0_34] : memref<8x16x16xf32, #tpu.memory_space<vmem>>, vector<1x16x16xf32>
    %63 = vector.shape_cast %62 : vector<1x16x16xf32> to vector<16x16xf32>
    %64 = vector.shape_cast %61 : vector<16x16xf32> to vector<1x16x16xf32>
    tpu.vector_store %arg9[%c3, %c0_33, %c0_34], %64 {strides = array<i32>} : memref<8x16x16xf32, #tpu.memory_space<vmem>>, vector<1x16x16xf32>,
    %65 = vector.extract_strided_slice %48 {offsets = [64, 64], sizes = [16, 16], strides = [1, 1]} : vector<128x128xf32> to vector<16x16xf32>
    %c4 = arith.constant 4 : index
    %c0_35 = arith.constant 0 : index
    %c0_36 = arith.constant 0 : index
    %66 = vector.load %arg9[%c4, %c0_35, %c0_36] : memref<8x16x16xf32, #tpu.memory_space<vmem>>, vector<1x16x16xf32>
    %67 = vector.shape_cast %66 : vector<1x16x16xf32> to vector<16x16xf32>
    %68 = vector.shape_cast %65 : vector<16x16xf32> to vector<1x16x16xf32>
    tpu.vector_store %arg9[%c4, %c0_35, %c0_36], %68 {strides = array<i32>} : memref<8x16x16xf32, #tpu.memory_space<vmem>>, vector<1x16x16xf32>,
    %69 = vector.extract_strided_slice %48 {offsets = [80, 80], sizes = [16, 16], strides = [1, 1]} : vector<128x128xf32> to vector<16x16xf32>
    %c5 = arith.constant 5 : index
    %c0_37 = arith.constant 0 : index
    %c0_38 = arith.constant 0 : index
    %70 = vector.load %arg9[%c5, %c0_37, %c0_38] : memref<8x16x16xf32, #tpu.memory_space<vmem>>, vector<1x16x16xf32>
    %71 = vector.shape_cast %70 : vector<1x16x16xf32> to vector<16x16xf32>
    %72 = vector.shape_cast %69 : vector<16x16xf32> to vector<1x16x16xf32>
    tpu.vector_store %arg9[%c5, %c0_37, %c0_38], %72 {strides = array<i32>} : memref<8x16x16xf32, #tpu.memory_space<vmem>>, vector<1x16x16xf32>,
    %73 = vector.extract_strided_slice %48 {offsets = [96, 96], sizes = [16, 16], strides = [1, 1]} : vector<128x128xf32> to vector<16x16xf32>
    %c6 = arith.constant 6 : index
    %c0_39 = arith.constant 0 : index
    %c0_40 = arith.constant 0 : index
    %74 = vector.load %arg9[%c6, %c0_39, %c0_40] : memref<8x16x16xf32, #tpu.memory_space<vmem>>, vector<1x16x16xf32>
    %75 = vector.shape_cast %74 : vector<1x16x16xf32> to vector<16x16xf32>
    %76 = vector.shape_cast %73 : vector<16x16xf32> to vector<1x16x16xf32>
    tpu.vector_store %arg9[%c6, %c0_39, %c0_40], %76 {strides = array<i32>} : memref<8x16x16xf32, #tpu.memory_space<vmem>>, vector<1x16x16xf32>,
    %77 = vector.extract_strided_slice %48 {offsets = [112, 112], sizes = [16, 16], strides = [1, 1]} : vector<128x128xf32> to vector<16x16xf32>
    %c7 = arith.constant 7 : index
    %c0_41 = arith.constant 0 : index
    %c0_42 = arith.constant 0 : index
    %78 = vector.load %arg9[%c7, %c0_41, %c0_42] : memref<8x16x16xf32, #tpu.memory_space<vmem>>, vector<1x16x16xf32>
    %79 = vector.shape_cast %78 : vector<1x16x16xf32> to vector<16x16xf32>
    %80 = vector.shape_cast %77 : vector<16x16xf32> to vector<1x16x16xf32>
    tpu.vector_store %arg9[%c7, %c0_41, %c0_42], %80 {strides = array<i32>} : memref<8x16x16xf32, #tpu.memory_space<vmem>>, vector<1x16x16xf32>,
    %cst_43 = arith.constant dense<0.000000e+00> : vector<128x128xf32>
    %81 = tpu.matmul %48, %29, %cst_43 {dimension_numbers = #tpu.dot_dimension_numbers<[1], [0], [0], [1], [0, 0, 1, 1], [], []>} : vector<128x128xf32>, vector<128x128xf32>, vector<128x128xf32> -> vector<128x128xf32>
    %c0_44 = arith.constant 0 : index
    %c0_45 = arith.constant 0 : index
    %82 = vector.load %arg4[%c0_44, %c0_45] : memref<128x32xf32, #tpu.memory_space<vmem>>, vector<128x32xf32>
    %cst_46 = arith.constant dense<0.000000e+00> : vector<128x32xf32>
    %83 = tpu.matmul %81, %82, %cst_46 {dimension_numbers = #tpu.dot_dimension_numbers<[1], [0], [0], [1], [0, 0, 1, 1], [], []>} : vector<128x128xf32>, vector<128x32xf32>, vector<128x32xf32> -> vector<128x32xf32>
    %84 = vector.shape_cast %83 : vector<128x32xf32> to vector<8x16x32xf32>
    %85 = vector.extract_strided_slice %84 {offsets = [0, 0, 0], sizes = [8, 8, 32], strides = [1, 1, 1]} : vector<8x16x32xf32> to vector<8x8x32xf32>
    %86 = vector.shape_cast %3 : vector<8x32xf32> to vector<1x8x32xf32>
    %87 = vector.broadcast %86 : vector<1x8x32xf32> to vector<8x8x32xf32>
    %88 = arith.addf %85, %87 : vector<8x8x32xf32>
    %c0_47 = arith.constant 0 : index
    %c0_48 = arith.constant 0 : index
    %c0_49 = arith.constant 0 : index
    %89 = vector.load %arg8[%c0_47, %c0_48, %c0_49] : memref<8x8x32xf32, #tpu.memory_space<vmem>>, vector<8x8x32xf32>
    tpu.vector_store %arg8[%c0_47, %c0_48, %c0_49], %88 {strides = array<i32>} : memref<8x8x32xf32, #tpu.memory_space<vmem>>, vector<8x8x32xf32>,
    return
  }
  func.func @transform_0(%arg0: i32) -> (i32, i32, i32) {
    %c0_i32 = arith.constant 0 : i32
    %c0_i32_0 = arith.constant 0 : i32
    %c0_i32_1 = arith.constant 0 : i32
    return %arg0, %c0_i32, %c0_i32_0 : i32, i32, i32
  }
  func.func @transform_1(%arg0: i32) -> (i32, i32) {
    %c0_i32 = arith.constant 0 : i32
    %c0_i32_0 = arith.constant 0 : i32
    %c0_i32_1 = arith.constant 0 : i32
    return %c0_i32, %c0_i32_0 : i32, i32
  }
  func.func @transform_2(%arg0: i32) -> (i32, i32) {
    %c0_i32 = arith.constant 0 : i32
    %c0_i32_0 = arith.constant 0 : i32
    %c0_i32_1 = arith.constant 0 : i32
    return %c0_i32, %c0_i32_0 : i32, i32
  }
  func.func @transform_3(%arg0: i32) -> (i32, i32) {
    %c0_i32 = arith.constant 0 : i32
    %c0_i32_0 = arith.constant 0 : i32
    %c0_i32_1 = arith.constant 0 : i32
    return %c0_i32, %c0_i32_0 : i32, i32
  }
  func.func @transform_4(%arg0: i32) -> (i32, i32) {
    %c0_i32 = arith.constant 0 : i32
    %c0_i32_0 = arith.constant 0 : i32
    %c0_i32_1 = arith.constant 0 : i32
    return %c0_i32, %c0_i32_0 : i32, i32
  }
  func.func @transform_5(%arg0: i32) -> (i32, i32) {
    %c0_i32 = arith.constant 0 : i32
    %c0_i32_0 = arith.constant 0 : i32
    %c0_i32_1 = arith.constant 0 : i32
    return %c0_i32, %c0_i32_0 : i32, i32
  }
  func.func @transform_6(%arg0: i32) -> (i32, i32) {
    %c0_i32 = arith.constant 0 : i32
    %c0_i32_0 = arith.constant 0 : i32
    %c0_i32_1 = arith.constant 0 : i32
    return %c0_i32, %c0_i32_0 : i32, i32
  }
  func.func @transform_7(%arg0: i32) -> (i32, i32, i32) {
    %c0_i32 = arith.constant 0 : i32
    %c0_i32_0 = arith.constant 0 : i32
    %c0_i32_1 = arith.constant 0 : i32
    return %arg0, %c0_i32, %c0_i32_0 : i32, i32, i32
  }
  func.func @transform_8(%arg0: i32) -> (i32, i32, i32) {
    %c0_i32 = arith.constant 0 : i32
    %c0_i32_0 = arith.constant 0 : i32
    %c0_i32_1 = arith.constant 0 : i32
    return %arg0, %c0_i32, %c0_i32_0 : i32, i32, i32
  }
}

</mosaic_0001>

<bundles_post_ra>
// kernel: tpu_custom_call.1
= control target key start
LH: loop header
LB: loop body
LE: loop exit
PB: predicated region body
PF: predicated region fallthrough
CT: control target
= control target key end

     0   :  { %14 = vsyncpa [#allocation4], 0  ;;  %s1696_s0 = inlined_call_operand.hbm [shape: f32[8,8,8], index: 0, kind: input, shape index: {}]   ;;  %s1697_s1 = inlined_call_operand.vmem [shape: f32[8,128], index: 1, kind: input, shape index: {}]   ;;  %s1698_s2 = inlined_call_operand.hbm [shape: f32[128,384], index: 2, kind: input, shape index: {}]   ;;  %s1699_s3 = inlined_call_operand.vmem [shape: f32[128,32], index: 3, kind: input, shape index: {}]   ;;  %s1700_s4 = inlined_call_operand.hbm [shape: f32[8,640], index: 4, kind: input, shape index: {}]   ;;  %s1701_s5 = inlined_call_operand.vmem [shape: f32[8,384], index: 5, kind: input, shape index: {}]   ;;  %s1702_s6 = inlined_call_operand.vmem [shape: f32[128,128], index: 6, kind: input, shape index: {}]   ;;  %s1703_s7 = inlined_call_operand.hbm [shape: f32[8,8,32], index: 7, kind: output, shape index: {0}]   ;;  %s1704_s8 = inlined_call_operand.hbm [shape: f32[8,16,16], index: 8, kind: output, shape index: {1}]  }
   0x1   :  { %15 = vsyncpa [#allocation7], 0 }
   0x2   :  { %16 = vsyncpa [#allocation5], 0  ;;  %s37_s29 = sshll.u32 %s1698_s2, 4  ;;  %s38_s29 = int_to_ptr.hbm [resolvable:$true] %s37_s29 }
   0x3   :  { %17 = vsyncpa [#allocation11], 0  ;;  %s1283_s30 = smov [#allocation6]   ;;  %s22_s12 = sshll.u32 %s1696_s0, 4  ;;  %s23_s12 = int_to_ptr.hbm [resolvable:$true] %s22_s12 }
   0x4   :  { %s39_s9 = sshll.u32 %s1283_s30, 4  ;;  %s1284_s13 = smov 384   ;;  %s40_s9 = int_to_ptr.vmem [resolvable:$true] %s39_s9 }
   0x5   :  { %s1285_s14 = smov 24   ;;  %s1286_s15 = smov [#allocation3]  }
   0x6   :  { %45 = dma.hbm_to_vmem [thread:$0]  %s38_s29, 6144, %s40_s9, [#allocation7], %s1284_s13, %s1284_s13, %s1285_s14  }
   0x7   :  { %s24_s16 = sshll.u32 %s1286_s15, 4  ;;  %s1287_s17 = smov 128   ;;  %s25_s16 = int_to_ptr.vmem [resolvable:$true] %s24_s16 }
   0x8   :  { %s1288_s18 = smov 8   ;;  %s53_s20 = sshll.u32 %s1700_s4, 4  ;;  %s54_s20 = int_to_ptr.hbm [resolvable:$true] %s53_s20 }
   0x9   :  { %30 = dma.hbm_to_vmem [thread:$0]  %s23_s12, 1024, %s25_s16, [#allocation4], %s1287_s17, %s1287_s17, %s1288_s18  }
   0xa   :  { %s1289_s21 = smov [#allocation8]  }
   0xb   :  { %s55_s0 = sshll.u32 %s1289_s21, 4  ;;  %s56_s0 = int_to_ptr.vmem [resolvable:$true] %s55_s0 }
   0xc   :  { %58 = dma.hbm_to_vmem [thread:$0]  %s54_s20, 640, %s56_s0, [#allocation7]  }
   0xd   :  { %1275 = dma.done.wait [#allocation4], 1024  }
   0xe   :  { %1276 = vsyncadd [#allocation4], 4294966272 }
   0xf   :  { %1277 = dma.done.wait [#allocation7], 6784  }
  0x10   :  { %1278 = vsyncadd [#allocation7], 4294960512  ;;  %vm116_vm0 = vcmask 64512   ;;  %v115_v0 = vld [vmem:[%s1697_s1] sm:$0xff]  ;;  %v108_v2 = vld [vmem:[#allocation3 + $0x8] sm:$0xff]  ;;  %vm762_vm1 = vcmask 130048  }
  0x11   :  { %v107_v1 = vld [vmem:[#allocation3] sm:$0xff]  ;;  %156 = vmatpush.msra.mxu0 %v115_v0  ;;  %v109_v3 = vld [vmem:[#allocation3 + $0x10] sm:$0xff]  ;;  %v110_v4 = vld [vmem:[#allocation3 + $0x18] sm:$0xff]  ;;  %s1290_s27 = smov 112   ;;  %s1291_s12 = smov 96   ;;  %vm988_vm2 = vcmask 261120  }
  0x12   :  { %1035 = vmatmul.msk.f32.vlgmr.msra.gmra.mxu0 %vm116_vm0, %v107_v1  ;;  %v235_v5 = vld [vmem:[#allocation6 + $0x168] sm:$0xff]  ;;  %v236_v6 = vld [vmem:[#allocation6 + $0x170] sm:$0xff]  ;;  %v233_v8 = vld [vmem:[#allocation6 + $0x158] sm:$0xff]  ;;  %s1292_s13 = smov 80   ;;  %s1293_s21 = smov 64  }
  0x13   :  { %v232_v7 = vld [vmem:[#allocation6 + $0x150] sm:$0xff]  ;;  %238 = vmatpush.msra.mxu3 %v235_v5  ;;  %279 = vmatpush.msra.mxu1 %v236_v6  ;;  %v229_v9 = vld [vmem:[#allocation6 + $0x138] sm:$0xff]  ;;  %v230_v10 = vld [vmem:[#allocation6 + $0x140] sm:$0xff]  ;;  %s1295_s0 = smov 32   ;;  %s1296_s22 = smov 16  }
  0x14   :  { %1043 = vmatpush.msra.mxu2 %v236_v6  ;;  %v226_v11 = vld [vmem:[#allocation6 + $0x120] sm:$0xff]  ;;  %v227_v12 = vld [vmem:[#allocation6 + $0x128] sm:$0xff]  ;;  %v224_v15 = vld [vmem:[#allocation6 + $0x110] sm:$0xff]  ;;  %s1297_s23 = smov [#allocation10]   ;;  %s1016_s25 = sshll.u32 %s1704_s8, 4  ;;  %s1017_s25 = int_to_ptr.hbm [resolvable:$true] %s1016_s25 }
  0x15   :  { %239 = vmatpush.msra.mxu3 %v232_v7  ;;  %280 = vmatpush.msra.mxu1 %v233_v8  ;;  %v111_v13 = vld [vmem:[#allocation3 + $0x20] sm:$0xff]  ;;  %v223_v14 = vld [vmem:[#allocation6 + $0x108] sm:$0xff]  ;;  %v220_v16 = vld [vmem:[#allocation6 + $0xf0] sm:$0xff]  ;;  %s1014_s1 = sshll.u32 %s1297_s23, 4  ;;  %s1298_s8 = smov [#allocation9]   ;;  %s1015_s1 = int_to_ptr.vmem [resolvable:$true] %s1014_s1 }
  0x16   :  { %1044 = vmatpush.msra.mxu2 %v233_v8  ;;  %v221_v17 = vld [vmem:[#allocation6 + $0xf8] sm:$0xff]  ;;  %v218_v19 = vld [vmem:[#allocation6 + $0xe0] sm:$0xff]  ;;  %v215_v21 = vld [vmem:[#allocation6 + $0xc8] sm:$0xff]  ;;  %s1001_s26 = sshll.u32 %s1298_s8, 4  ;;  %s1003_s28 = sshll.u32 %s1703_s7, 4  ;;  %s1002_s26 = int_to_ptr.vmem [resolvable:$true] %s1001_s26  ;;  %s1004_s28 = int_to_ptr.hbm [resolvable:$true] %s1003_s28 }
  0x17   :  { %240 = vmatpush.msra.mxu3 %v229_v9  ;;  %281 = vmatpush.msra.mxu1 %v230_v10  ;;  %v217_v18 = vld [vmem:[#allocation6 + $0xd8] sm:$0xff]  ;;  %v214_v20 = vld [vmem:[#allocation6 + $0xc0] sm:$0xff]  ;;  %v112_v22 = vld [vmem:[#allocation3 + $0x28] sm:$0xff] }
  0x18   :  { %1045 = vmatpush.msra.mxu2 %v230_v10  ;;  %v211_v23 = vld [vmem:[#allocation6 + $0xa8] sm:$0xff]  ;;  %v212_v24 = vld [vmem:[#allocation6 + $0xb0] sm:$0xff]  ;;  %v209_v26 = vld [vmem:[#allocation6 + $0x98] sm:$0xff] }
  0x19   :  { %241 = vmatpush.msra.mxu3 %v226_v11  ;;  %282 = vmatpush.msra.mxu1 %v227_v12  ;;  %v208_v25 = vld [vmem:[#allocation6 + $0x90] sm:$0xff]  ;;  %v205_v27 = vld [vmem:[#allocation6 + $0x78] sm:$0xff]  ;;  %v206_v28 = vld [vmem:[#allocation6 + $0x80] sm:$0xff] }
  0x1a   :  { %1036 = vmatmul.msk.f32.gmra.mxu0 %vm116_vm0, %v108_v2  ;;  %1046 = vmatpush.msra.mxu2 %v227_v12  ;;  %v202_v29 = vld [vmem:[#allocation6 + $0x60] sm:$0xff]  ;;  %v203_v30 = vld [vmem:[#allocation6 + $0x68] sm:$0xff]  ;;  %v113_v31 = vld [vmem:[#allocation3 + $0x30] sm:$0xff] }
  0x1b   :  { %242 = vmatpush.msra.mxu3 %v223_v14  ;;  %283 = vmatpush.msra.mxu1 %v224_v15  ;;  %v199_v32 = vld [vmem:[#allocation6 + $0x48] sm:$0xff]  ;;  %v200_v33 = vld [vmem:[#allocation6 + $0x50] sm:$0xff]  ;;  %v197_v35 = vld [vmem:[#allocation6 + $0x38] sm:$0xff] }
  0x1c   :  { %1047 = vmatpush.msra.mxu2 %v224_v15  ;;  %v196_v34 = vld [vmem:[#allocation6 + $0x30] sm:$0xff]  ;;  %v114_v36 = vld [vmem:[#allocation3 + $0x38] sm:$0xff]  ;;  %v194_v38 = vld [vmem:[#allocation6 + $0x20] sm:$0xff] }
  0x1d   :  { %243 = vmatpush.msra.mxu3 %v220_v16  ;;  %284 = vmatpush.msra.mxu1 %v221_v17  ;;  %v193_v37 = vld [vmem:[#allocation6 + $0x18] sm:$0xff]  ;;  %v190_v39 = vld [vmem:[#allocation6] sm:$0xff]  ;;  %v191_v40 = vld [vmem:[#allocation6 + $0x8] sm:$0xff] }
  0x1e   :  { %1048 = vmatpush.msra.mxu2 %v221_v17  ;;  %v75_v41 = vld [vmem:[#allocation8] sm:$0xff]  ;;  %v237_v44 = vld [vmem:[#allocation6 + $0x178] sm:$0xff]  ;;  %v231_v46 = vld [vmem:[#allocation6 + $0x148] sm:$0xff] }
  0x1f   :  { %244 = vmatpush.msra.mxu3 %v217_v18  ;;  %285 = vmatpush.msra.mxu1 %v218_v19  ;;  %v234_v45 = vld [vmem:[#allocation6 + $0x160] sm:$0xff]  ;;  %v228_v49 = vld [vmem:[#allocation6 + $0x130] sm:$0xff]  ;;  %v225_v50 = vld [vmem:[#allocation6 + $0x118] sm:$0xff] }
  0x20   :  { %1049 = vmatpush.msra.mxu2 %v218_v19  ;;  %v222_v51 = vld [vmem:[#allocation6 + $0x100] sm:$0xff]  ;;  %v219_v52 = vld [vmem:[#allocation6 + $0xe8] sm:$0xff]  ;;  %v216_v55 = vld [vmem:[#allocation6 + $0xd0] sm:$0xff] }
  0x21   :  { %245 = vmatpush.msra.mxu3 %v214_v20  ;;  %286 = vmatpush.msra.mxu1 %v215_v21  ;;  %v213_v56 = vld [vmem:[#allocation6 + $0xb8] sm:$0xff]  ;;  %v210_v57 = vld [vmem:[#allocation6 + $0xa0] sm:$0xff]  ;;  %v207_v58 = vld [vmem:[#allocation6 + $0x88] sm:$0xff] }
  0x22   :  { %1037 = vmatmul.msk.f32.gmra.mxu0 %vm116_vm0, %v109_v3  ;;  %1050 = vmatpush.msra.mxu2 %v215_v21  ;;  %v204_v61 = vld [vmem:[#allocation6 + $0x70] sm:$0xff]  ;;  %v201_v62 = vld [vmem:[#allocation6 + $0x58] sm:$0xff]  ;;  %v198_v63 = vld [vmem:[#allocation6 + $0x40] sm:$0xff] }
  0x23   :  { %246 = vmatpush.msra.mxu3 %v211_v23  ;;  %287 = vmatpush.msra.mxu1 %v212_v24  ;;  %v195_v0 = vld [vmem:[#allocation6 + $0x28] sm:$0xff]  ;;  %v192_v1 = vld [vmem:[#allocation6 + $0x10] sm:$0xff] }
  0x24   :  { %1051 = vmatpush.msra.mxu2 %v212_v24  ;;  %v1382_v15 = vld [vmem:[#allocation8 + $0x8] sm:$0xff] }
  0x25   :  { %247 = vmatpush.msra.mxu3 %v208_v25  ;;  %288 = vmatpush.msra.mxu1 %v209_v26 }
  0x26   :  { %1052 = vmatpush.msra.mxu2 %v209_v26  ;;  %v77_v26 = vld [vmem:[#allocation8 + $0x10] sm:$0xff] }
  0x27   :  { %248 = vmatpush.msra.mxu3 %v205_v27  ;;  %289 = vmatpush.msra.mxu1 %v206_v28 }
  0x28   :  { %1053 = vmatpush.msra.mxu2 %v206_v28 }
  0x29   :  { %249 = vmatpush.msra.mxu3 %v202_v29  ;;  %290 = vmatpush.msra.mxu1 %v203_v30 }
  0x2a   :  { %1038 = vmatmul.msk.f32.gmra.mxu0 %vm116_vm0, %v110_v4  ;;  %1054 = vmatpush.msra.mxu2 %v203_v30 }
  0x2b   :  { %250 = vmatpush.msra.mxu3 %v199_v32  ;;  %291 = vmatpush.msra.mxu1 %v200_v33 }
  0x2c   :  { %1055 = vmatpush.msra.mxu2 %v200_v33 }
  0x2d   :  { %251 = vmatpush.msra.mxu3 %v196_v34  ;;  %292 = vmatpush.msra.mxu1 %v197_v35 }
  0x2e   :  { %1056 = vmatpush.msra.mxu2 %v197_v35 }
  0x2f   :  { %252 = vmatpush.msra.mxu3 %v193_v37  ;;  %293 = vmatpush.msra.mxu1 %v194_v38 }
  0x30   :  { %1057 = vmatpush.msra.mxu2 %v194_v38 }
  0x31   :  { %253 = vmatpush.msra.mxu3 %v190_v39  ;;  %294 = vmatpush.msra.mxu1 %v191_v40 }
  0x32   :  { %1039 = vmatmul.msk.f32.gmra.mxu0 %vm116_vm0, %v111_v13  ;;  %1058 = vmatpush.msra.mxu2 %v191_v40  ;;  %v1376_v13 = vld [vmem:[%s1701_s5 + $0x8] sm:$0xff] }
  0x33   :  { %320 = vmatpush.msrb.mxu3 %v237_v44  ;;  %457 = vmatpush.xpose.msrb.mxu0 %v1376_v13 }
  0x35   :  { %321 = vmatpush.msrb.mxu3 %v234_v45 }
  0x37   :  { %322 = vmatpush.msrb.mxu3 %v231_v46 }
  0x39   :  { %323 = vmatpush.msrb.mxu3 %v228_v49 }
  0x3a   :  { %1040 = vmatmul.msk.f32.gmra.mxu0 %vm116_vm0, %v112_v22 }
  0x3b   :  { %324 = vmatpush.msrb.mxu3 %v225_v50  ;;  %v80_v50 = vld [vmem:[%s1701_s5] sm:$0xff] }
  0x3d   :  { %325 = vmatpush.msrb.mxu3 %v222_v51  ;;  %v78_v51 = vld [vmem:[#allocation8 + $0x18] sm:$0xff] }
  0x3f   :  { %326 = vmatpush.msrb.mxu3 %v219_v52 }
  0x41   :  { %327 = vmatpush.msrb.mxu3 %v216_v55 }
  0x42   :  { %1041 = vmatmul.msk.f32.gmra.mxu0 %vm116_vm0, %v113_v31 }
  0x43   :  { %328 = vmatpush.msrb.mxu3 %v213_v56 }
  0x45   :  { %329 = vmatpush.msrb.mxu3 %v210_v57 }
  0x47   :  { %330 = vmatpush.msrb.mxu3 %v207_v58 }
  0x49   :  { %331 = vmatpush.msrb.mxu3 %v204_v61 }
  0x4a   :  { %1042 = vmatmul.msk.f32.gmra.mxu0 %vm116_vm0, %v114_v36 }
  0x4b   :  { %332 = vmatpush.msrb.mxu3 %v201_v62 }
  0x4d   :  { %333 = vmatpush.msrb.mxu3 %v198_v63 }
  0x4f   :  { %334 = vmatpush.msrb.mxu3 %v195_v0 }
  0x51   :  { %335 = vmatpush.msrb.mxu3 %v192_v1  ;;  %v538_v1 = vld [vmem:[%s1702_s6] sm:$0xff] }
  0x8f   :  { %v158_v42 = vpop.f32.mrf.mxu0 }
  0x90   :  { %v182_v43 = vmul.f32 %v158_v42, %v75_v41 }
  0x92   :  { %254 = vmatmul.f32.vlgmr.msra.gmra.mxu3 %v182_v43  ;;  %295 = vmatmul.f32.vlgmr.msra.gmra.mxu1 %v182_v43 }
  0x93   :  { %1059 = vmatpush.xpose.msra.mxu3 %v1376_v13 }
  0x97   :  { %v161_v47 = vpop.f32.mrf.mxu0 }
  0x98   :  { %v183_v48 = vmul.f32 %v161_v47, %v75_v41 }
  0x9a   :  { %257 = vmatmul.f32.gmra.mxu3 %v183_v48  ;;  %298 = vmatmul.f32.gmra.mxu1 %v183_v48 }
  0x9f   :  { %v164_v53 = vpop.f32.mrf.mxu0 }
  0xa0   :  { %v184_v54 = vmul.f32 %v164_v53, %v75_v41 }
  0xa2   :  { %260 = vmatmul.f32.gmra.mxu3 %v184_v54  ;;  %301 = vmatmul.f32.gmra.mxu1 %v184_v54 }
  0xa7   :  { %v167_v59 = vpop.f32.mrf.mxu0 }
  0xa8   :  { %v185_v60 = vmul.f32 %v167_v59, %v75_v41 }
  0xaa   :  { %263 = vmatmul.f32.gmra.mxu3 %v185_v60  ;;  %304 = vmatmul.f32.gmra.mxu1 %v185_v60 }
  0xaf   :  { %v170_v2 = vpop.f32.mrf.mxu0 }
  0xb0   :  { %v186_v3 = vmul.f32 %v170_v2, %v75_v41 }
  0xb2   :  { %266 = vmatmul.f32.gmra.mxu3 %v186_v3  ;;  %307 = vmatmul.f32.vlgmr.msra.gmra.mxu2 %v186_v3 }
  0xb7   :  { %v173_v4 = vpop.f32.mrf.mxu0 }
  0xb8   :  { %v187_v5 = vmul.f32 %v173_v4, %v75_v41 }
  0xba   :  { %269 = vmatmul.f32.gmra.mxu3 %v187_v5  ;;  %310 = vmatmul.f32.gmra.mxu2 %v187_v5 }
  0xbf   :  { %v176_v6 = vpop.f32.mrf.mxu0 }
  0xc0   :  { %v188_v7 = vmul.f32 %v176_v6, %v75_v41 }
  0xc2   :  { %272 = vmatmul.f32.gmra.mxu3 %v188_v7  ;;  %313 = vmatmul.f32.gmra.mxu2 %v188_v7 }
  0xc7   :  { %v179_v8 = vpop.f32.mrf.mxu0 }
  0xc8   :  { %v189_v9 = vmul.f32 %v179_v8, %v75_v41  ;;  %v82_v41 = vld [vmem:[%s1701_s5 + $0x10] sm:$0xff] }
  0xc9   :  { %842 = vmatpush.msrb.mxu1 %v82_v41 }
  0xca   :  { %275 = vmatmul.f32.gmra.mxu3 %v189_v9  ;;  %316 = vmatmul.f32.gmra.mxu2 %v189_v9 }
  0xd2   :  { %336 = vmatmul.f32.vlgmr.msrb.gmra.mxu3 %v182_v43 }
  0xda   :  { %339 = vmatmul.f32.gmra.mxu3 %v183_v48 }
  0xe2   :  { %342 = vmatmul.f32.gmra.mxu3 %v184_v54 }
  0xea   :  { %345 = vmatmul.f32.gmra.mxu3 %v185_v60 }
  0xf2   :  { %348 = vmatmul.f32.gmra.mxu3 %v186_v3 }
  0xfa   :  { %351 = vmatmul.f32.gmra.mxu3 %v187_v5  ;;  %v539_v5 = vld [vmem:[%s1702_s6 + $0x8] sm:$0xff] }
 0x102   :  { %354 = vmatmul.f32.gmra.mxu3 %v188_v7 }
 0x10a   :  { %357 = vmatmul.f32.gmra.mxu3 %v189_v9  ;;  %v540_v9 = vld [vmem:[%s1702_s6 + $0x10] sm:$0xff] }
 0x10f   :  { %v296_v25 = vpop.f32.mrf.mxu1 }
 0x110   :  { %v362_v48 = vadd.f32 %v296_v25, %v77_v26  ;;  %v544_v25 = vld [vmem:[%s1702_s6 + $0x30] sm:$0xff] }
 0x115   :  { %v1367_v10 = vpop.f32.mrf.mxu3 }
 0x116   :  { %v361_v49 = vadd.f32 %v1367_v10, %v1382_v15 }
 0x117   :  { %v299_v33 = vpop.f32.mrf.mxu1 }
 0x118   :  { %v365_v46 = vadd.f32 %v299_v33, %v77_v26 }
 0x11d   :  { %v1369_v11 = vpop.f32.mrf.mxu3 }
 0x11e   :  { %v364_v56 = vadd.f32 %v1369_v11, %v1382_v15 }
 0x11f   :  { %v302_v36 = vpop.f32.mrf.mxu1 }
 0x120   :  { %v368_v44 = vadd.f32 %v302_v36, %v77_v26 }
 0x125   :  { %v1371_v12 = vpop.f32.mrf.mxu3 }
 0x126   :  { %v367_v61 = vadd.f32 %v1371_v12, %v1382_v15 }
 0x127   :  { %v305_v39 = vpop.f32.mrf.mxu1 }
 0x128   :  { %v371_v42 = vadd.f32 %v305_v39, %v77_v26 }
 0x12d   :  { %v1380_v14 = vpop.f32.mrf.mxu3 }
 0x12e   :  { %v370_v63 = vadd.f32 %v1380_v14, %v1382_v15 }
 0x135   :  { %v267_v16 = vpop.f32.mrf.mxu3  ;;  %v308_v17 = vpop.f32.mrf.mxu2 }
 0x136   :  { %v1385_v18 = vadd.f32 %v267_v16, %v1382_v15  ;;  %v374_v38 = vadd.f32 %v308_v17, %v77_v26  ;;  %v542_v17 = vld [vmem:[%s1702_s6 + $0x20] sm:$0xff] }
 0x13d   :  { %v270_v19 = vpop.f32.mrf.mxu3  ;;  %v311_v20 = vpop.f32.mrf.mxu2 }
 0x13e   :  { %v1388_v21 = vadd.f32 %v270_v19, %v1382_v15  ;;  %v377_v35 = vadd.f32 %v311_v20, %v77_v26 }
 0x145   :  { %v273_v22 = vpop.f32.mrf.mxu3  ;;  %v314_v23 = vpop.f32.mrf.mxu2 }
 0x146   :  { %v1391_v24 = vadd.f32 %v273_v22, %v1382_v15  ;;  %v380_v32 = vadd.f32 %v314_v23, %v77_v26 }
 0x14d   :  { %v276_v27 = vpop.f32.mrf.mxu3  ;;  %v317_v28 = vpop.f32.mrf.mxu2 }
 0x14e   :  { %v1394_v29 = vadd.f32 %v276_v27, %v1382_v15  ;;  %v383_v30 = vadd.f32 %v317_v28, %v77_v26 }
 0x150   :  { %458 = vmatpush.xpose.msrb.mxu0 %v383_v30  ;;  %1060 = vmatpush.xpose.msra.mxu3 %v383_v30 }
 0x154   :  { %459 = vmatpush.xpose.msrb.mxu0 %v1376_v13  ;;  %1061 = vmatpush.xpose.msra.mxu3 %v1376_v13 }
 0x155   :  { %v1398_v31 = vpop.f32.mrf.mxu3 }
 0x156   :  { %v363_v62 = vadd.f32 %v1398_v31, %v78_v51 }
 0x158   :  { %460 = vmatpush.xpose.msrb.mxu0 %v380_v32  ;;  %1062 = vmatpush.xpose.msra.mxu3 %v380_v32 }
 0x15c   :  { %461 = vmatpush.xpose.msrb.mxu0 %v1376_v13  ;;  %1063 = vmatpush.xpose.msra.mxu3 %v1376_v13 }
 0x15d   :  { %v1402_v34 = vpop.f32.mrf.mxu3 }
 0x15e   :  { %v366_v60 = vadd.f32 %v1402_v34, %v78_v51 }
 0x160   :  { %462 = vmatpush.xpose.msrb.mxu0 %v377_v35  ;;  %1064 = vmatpush.xpose.msra.mxu3 %v377_v35 }
 0x164   :  { %463 = vmatpush.xpose.msrb.mxu0 %v1376_v13  ;;  %1065 = vmatpush.xpose.msra.mxu3 %v1376_v13 }
 0x165   :  { %v343_v37 = vpop.f32.mrf.mxu3 }
 0x166   :  { %v369_v59 = vadd.f32 %v343_v37, %v78_v51 }
 0x168   :  { %464 = vmatpush.xpose.msrb.mxu0 %v374_v38  ;;  %1066 = vmatpush.xpose.msra.mxu3 %v374_v38 }
 0x16c   :  { %465 = vmatpush.xpose.msrb.mxu0 %v1376_v13  ;;  %1067 = vmatpush.xpose.msra.mxu3 %v1376_v13 }
 0x16d   :  { %v346_v40 = vpop.f32.mrf.mxu3 }
 0x16e   :  { %v372_v58 = vadd.f32 %v346_v40, %v78_v51 }
 0x170   :  { %466 = vmatpush.xpose.msrb.mxu0 %v371_v42  ;;  %1068 = vmatpush.xpose.msra.mxu3 %v371_v42  ;;  %v546_v42 = vld [vmem:[%s1702_s6 + $0x40] sm:$0xff] }
 0x174   :  { %467 = vmatpush.xpose.msrb.mxu0 %v1376_v13  ;;  %1069 = vmatpush.xpose.msra.mxu3 %v1376_v13 }
 0x175   :  { %v349_v43 = vpop.f32.mrf.mxu3 }
 0x176   :  { %v375_v57 = vadd.f32 %v349_v43, %v78_v51 }
 0x178   :  { %468 = vmatpush.xpose.msrb.mxu0 %v368_v44  ;;  %1070 = vmatpush.xpose.msra.mxu3 %v368_v44 }
 0x17c   :  { %469 = vmatpush.xpose.msrb.mxu0 %v1376_v13  ;;  %1071 = vmatpush.xpose.msra.mxu3 %v1376_v13 }
 0x17d   :  { %v352_v45 = vpop.f32.mrf.mxu3 }
 0x17e   :  { %v378_v55 = vadd.f32 %v352_v45, %v78_v51 }
 0x180   :  { %470 = vmatpush.xpose.msrb.mxu0 %v365_v46  ;;  %1072 = vmatpush.xpose.msra.mxu3 %v365_v46 }
 0x184   :  { %471 = vmatpush.xpose.msrb.mxu0 %v1376_v13  ;;  %1073 = vmatpush.xpose.msra.mxu3 %v1376_v13  ;;  %v541_v13 = vld [vmem:[%s1702_s6 + $0x18] sm:$0xff] }
 0x185   :  { %v355_v47 = vpop.f32.mrf.mxu3 }
 0x186   :  { %v381_v54 = vadd.f32 %v355_v47, %v78_v51 }
 0x188   :  { %472 = vmatpush.xpose.msrb.mxu0 %v362_v48  ;;  %1074 = vmatpush.xpose.msra.mxu3 %v362_v48 }
 0x18b   :  { %473 = vmatmul.f32.vlgmr.msrb.gmra.mxu0 %v361_v49  ;;  %518 = vmatmul.f32.vlgmr.msra.gmra.mxu3 %v80_v50 }
 0x18d   :  { %v358_v52 = vpop.f32.mrf.mxu3 }
 0x18e   :  { %v384_v53 = vadd.f32 %v358_v52, %v78_v51 }
 0x190   :  { %843 = vmatpush.msrb.mxu1 %v384_v53 }
 0x192   :  { %844 = vmatpush.msrb.mxu1 %v82_v41 }
 0x193   :  { %476 = vmatmul.f32.gmra.mxu0 %v80_v50 }
 0x194   :  { %845 = vmatpush.msrb.mxu1 %v381_v54 }
 0x196   :  { %846 = vmatpush.msrb.mxu1 %v82_v41 }
 0x198   :  { %847 = vmatpush.msrb.mxu1 %v378_v55 }
 0x19a   :  { %848 = vmatpush.msrb.mxu1 %v82_v41 }
 0x19b   :  { %479 = vmatmul.f32.gmra.mxu0 %v364_v56 }
 0x19c   :  { %849 = vmatpush.msrb.mxu1 %v375_v57 }
 0x19e   :  { %850 = vmatpush.msrb.mxu1 %v82_v41 }
 0x1a0   :  { %851 = vmatpush.msrb.mxu1 %v372_v58  ;;  %v548_v58 = vld [vmem:[%s1702_s6 + $0x50] sm:$0xff] }
 0x1a2   :  { %852 = vmatpush.msrb.mxu1 %v82_v41 }
 0x1a3   :  { %482 = vmatmul.f32.gmra.mxu0 %v80_v50 }
 0x1a4   :  { %853 = vmatpush.msrb.mxu1 %v369_v59 }
 0x1a6   :  { %854 = vmatpush.msrb.mxu1 %v82_v41 }
 0x1a8   :  { %855 = vmatpush.msrb.mxu1 %v366_v60 }
 0x1aa   :  { %856 = vmatpush.msrb.mxu1 %v82_v41 }
 0x1ab   :  { %485 = vmatmul.f32.gmra.mxu0 %v367_v61 }
 0x1ac   :  { %857 = vmatpush.msrb.mxu1 %v363_v62 }
 0x1b3   :  { %488 = vmatmul.f32.gmra.mxu0 %v80_v50 }
 0x1bb   :  { %491 = vmatmul.f32.gmra.mxu0 %v370_v63 }
 0x1c3   :  { %494 = vmatmul.f32.gmra.mxu0 %v80_v50 }
 0x1cb   :  { %497 = vmatmul.f32.gmra.mxu0 %v1385_v18 }
 0x1d3   :  { %500 = vmatmul.f32.gmra.mxu0 %v80_v50 }
 0x1db   :  { %503 = vmatmul.f32.gmra.mxu0 %v1388_v21  ;;  %v543_v21 = vld [vmem:[%s1702_s6 + $0x28] sm:$0xff] }
 0x1e3   :  { %506 = vmatmul.f32.gmra.mxu0 %v80_v50 }
 0x1eb   :  { %509 = vmatmul.f32.gmra.mxu0 %v1391_v24 }
 0x1f3   :  { %512 = vmatmul.f32.gmra.mxu0 %v80_v50  ;;  %v547_v50 = vld [vmem:[%s1702_s6 + $0x48] sm:$0xff] }
 0x1fb   :  { %515 = vmatmul.f32.gmra.mxu0 %v1394_v29  ;;  %v545_v29 = vld [vmem:[%s1702_s6 + $0x38] sm:$0xff] }
 0x208   :  { %v474_v0 = vpop.f32.mrf.mxu0 }
 0x209   :  { %v522_v2 = vmul.f32 4.4194174, %v474_v0 }
 0x20b   :  { %v554_v3 = vadd.f32 %v538_v1, %v522_v2  ;;  %v549_v1 = vld [vmem:[%s1702_s6 + $0x58] sm:$0xff] }
 0x20d   :  { %570 = vmax.xlane.f32.xlu0 %v554_v3 }
 0x210   :  { %v477_v4 = vpop.f32.mrf.mxu0 }
 0x211   :  { %v523_v6 = vmul.f32 4.4194174, %v477_v4 }
 0x213   :  { %v555_v7 = vadd.f32 %v539_v5, %v523_v6 }
 0x215   :  { %572 = vmax.xlane.f32.xlu0 %v555_v7 }
 0x218   :  { %v480_v8 = vpop.f32.mrf.mxu0 }
 0x219   :  { %v524_v10 = vmul.f32 4.4194174, %v480_v8 }
 0x21b   :  { %v556_v11 = vadd.f32 %v540_v9, %v524_v10  ;;  %v550_v9 = vld [vmem:[%s1702_s6 + $0x60] sm:$0xff] }
 0x21d   :  { %574 = vmax.xlane.f32.xlu1 %v556_v11 }
 0x220   :  { %v483_v12 = vpop.f32.mrf.mxu0 }
 0x221   :  { %v525_v14 = vmul.f32 4.4194174, %v483_v12 }
 0x223   :  { %v557_v15 = vadd.f32 %v541_v13, %v525_v14 }
 0x225   :  { %576 = vmax.xlane.f32.xlu1 %v557_v15 }
 0x228   :  { %v486_v16 = vpop.f32.mrf.mxu0 }
 0x229   :  { %v526_v18 = vmul.f32 4.4194174, %v486_v16 }
 0x22b   :  { %v558_v19 = vadd.f32 %v542_v17, %v526_v18  ;;  %v551_v17 = vld [vmem:[%s1702_s6 + $0x68] sm:$0xff] }
 0x22d   :  { %578 = vmax.xlane.f32.xlu2 %v558_v19 }
 0x230   :  { %v489_v20 = vpop.f32.mrf.mxu0 }
 0x231   :  { %v527_v22 = vmul.f32 4.4194174, %v489_v20 }
 0x233   :  { %v1452_v23 = vadd.f32 %v543_v21, %v527_v22 }
 0x235   :  { %580 = vmax.xlane.f32.xlu2 %v1452_v23 }
 0x238   :  { %v492_v24 = vpop.f32.mrf.mxu0 }
 0x239   :  { %v528_v26 = vmul.f32 4.4194174, %v492_v24 }
 0x23b   :  { %v1458_v27 = vadd.f32 %v544_v25, %v528_v26  ;;  %v552_v25 = vld [vmem:[%s1702_s6 + $0x70] sm:$0xff]  ;;  %v519_v26 = vpop.f32.mrf.mxu3 }
 0x23d   :  { %582 = vmax.xlane.f32.xlu0 %v1458_v27 }
 0x240   :  { %v495_v28 = vpop.f32.mrf.mxu0 }
 0x241   :  { %v529_v30 = vmul.f32 4.4194174, %v495_v28 }
 0x243   :  { %v1464_v31 = vadd.f32 %v545_v29, %v529_v30  ;;  %v537_v29 = vmul.f32 4.4194174, %v519_v26  ;;  %v553_v30 = vld [vmem:[%s1702_s6 + $0x78] sm:$0xff] }
 0x245   :  { %584 = vmax.xlane.f32.xlu2 %v1464_v31 }
 0x248   :  { %v498_v32 = vpop.f32.mrf.mxu0 }
 0x249   :  { %v530_v41 = vmul.f32 4.4194174, %v498_v32 }
 0x24b   :  { %v1473_v45 = vadd.f32 %v546_v42, %v530_v41 }
 0x250   :  { %v501_v37 = vpop.f32.mrf.mxu0 }
 0x251   :  { %v531_v49 = vmul.f32 4.4194174, %v501_v37 }
 0x253   :  { %v1482_v52 = vadd.f32 %v547_v50, %v531_v49 }
 0x258   :  { %v504_v47 = vpop.f32.mrf.mxu0 }
 0x259   :  { %v532_v57 = vmul.f32 4.4194174, %v504_v47 }
 0x25b   :  { %v1491_v61 = vadd.f32 %v548_v58, %v532_v57 }
 0x260   :  { %v507_v56 = vpop.f32.mrf.mxu0 }
 0x261   :  { %v533_v0 = vmul.f32 4.4194174, %v507_v56 }
 0x263   :  { %v1500_v4 = vadd.f32 %v549_v1, %v533_v0 }
 0x268   :  { %v510_v2 = vpop.f32.mrf.mxu0 }
 0x269   :  { %v534_v8 = vmul.f32 4.4194174, %v510_v2 }
 0x26b   :  { %v1511_v13 = vadd.f32 %v550_v9, %v534_v8 }
 0x280   :  { %v571_v33 = vpop.xlane.xlu0 %570 }
 0x281   :  { %v602_v34 = vsub.f32 %v554_v3, %v571_v33 }
 0x283   :  { %v618_v35 = vmul.f32 1.442695, %v602_v34 }
 0x285   :  { %1091 = vpow2.f32 %v618_v35 }
 0x288   :  { %v573_v36 = vpop.xlane.xlu0 %572 }
 0x289   :  { %v603_v38 = vsub.f32 %v555_v7, %v573_v36 }
 0x28b   :  { %v1467_v39 = vpop.eup %1091  ;;  %v620_v40 = vmul.f32 1.442695, %v603_v38 }
 0x28c   :  { %650 = vadd.xlane.f32.xlu1 %v1467_v39 }
 0x28d   :  { %1093 = vpow2.f32 %v620_v40 }
 0x290   :  { %v575_v43 = vpop.xlane.xlu1 %574 }
 0x291   :  { %v604_v44 = vsub.f32 %v556_v11, %v575_v43  ;;  %v513_v11 = vpop.f32.mrf.mxu0 }
 0x292   :  { %v535_v16 = vmul.f32 4.4194174, %v513_v11 }
 0x293   :  { %v1475_v46 = vpop.eup %1093  ;;  %v622_v48 = vmul.f32 1.442695, %v604_v44 }
 0x294   :  { %652 = vadd.xlane.f32.xlu0 %v1475_v46  ;;  %586 = vmax.xlane.f32.xlu1 %v1473_v45 }
 0x295   :  { %1095 = vpow2.f32 %v622_v48 }
 0x298   :  { %v577_v51 = vpop.xlane.xlu1 %576 }
 0x299   :  { %v605_v53 = vsub.f32 %v557_v15, %v577_v51  ;;  %v516_v22 = vpop.f32.mrf.mxu0 }
 0x29a   :  { %v536_v24 = vmul.f32 4.4194174, %v516_v22 }
 0x29b   :  { %v1484_v54 = vpop.eup %1095  ;;  %v624_v55 = vmul.f32 1.442695, %v605_v53 }
 0x29c   :  { %654 = vadd.xlane.f32.xlu2 %v1484_v54  ;;  %588 = vmax.xlane.f32.xlu0 %v1482_v52 }
 0x29d   :  { %1097 = vpow2.f32 %v624_v55 }
 0x2a0   :  { %v579_v59 = vpop.xlane.xlu2 %578 }
 0x2a1   :  { %v606_v60 = vsub.f32 %v558_v19, %v579_v59  ;;  %v1520_v19 = vadd.f32 %v551_v17, %v535_v16 }
 0x2a3   :  { %v1493_v62 = vpop.eup %1097  ;;  %v626_v63 = vmul.f32 1.442695, %v606_v60 }
 0x2a4   :  { %656 = vadd.xlane.f32.xlu1 %v1493_v62  ;;  %590 = vmax.xlane.f32.xlu2 %v1491_v61 }
 0x2a5   :  { %1099 = vpow2.f32 %v626_v63 }
 0x2a8   :  { %v581_v3 = vpop.xlane.xlu2 %580 }
 0x2a9   :  { %v607_v5 = vsub.f32 %v1452_v23, %v581_v3 }
 0x2ab   :  { %v1503_v6 = vpop.eup %1099  ;;  %v628_v7 = vmul.f32 1.442695, %v607_v5 }
 0x2ac   :  { %658 = vadd.xlane.f32.xlu0 %v1503_v6  ;;  %592 = vmax.xlane.f32.xlu1 %v1500_v4 }
 0x2ad   :  { %1101 = vpow2.f32 %v628_v7 }
 0x2b0   :  { %v583_v10 = vpop.xlane.xlu0 %582 }
 0x2b1   :  { %v608_v12 = vsub.f32 %v1458_v27, %v583_v10  ;;  %v1530_v27 = vadd.f32 %v552_v25, %v536_v24 }
 0x2b3   :  { %v1513_v14 = vpop.eup %1101  ;;  %v630_v15 = vmul.f32 1.442695, %v608_v12 }
 0x2b4   :  { %660 = vadd.xlane.f32.xlu2 %v1513_v14  ;;  %594 = vmax.xlane.f32.xlu0 %v1511_v13 }
 0x2b5   :  { %1103 = vpow2.f32 %v630_v15 }
 0x2b8   :  { %v585_v18 = vpop.xlane.xlu2 %584 }
 0x2b9   :  { %v609_v20 = vsub.f32 %v1464_v31, %v585_v18  ;;  %v1539_v31 = vadd.f32 %v553_v30, %v537_v29 }
 0x2bb   :  { %v1523_v21 = vpop.eup %1103  ;;  %v632_v23 = vmul.f32 1.442695, %v609_v20 }
 0x2bc   :  { %662 = vadd.xlane.f32.xlu1 %v1523_v21  ;;  %596 = vmax.xlane.f32.xlu2 %v1520_v19 }
 0x2bd   :  { %1105 = vpow2.f32 %v632_v23 }
 0x2c3   :  { %v1532_v28 = vpop.eup %1105 }
 0x2c4   :  { %664 = vadd.xlane.f32.xlu0 %v1532_v28  ;;  %598 = vmax.xlane.f32.xlu1 %v1530_v27 }
 0x2cc   :  { %600 = vmax.xlane.f32.xlu0 %v1539_v31 }
 0x2ff   :  { %v651_v32 = vpop.xlane.xlu1 %650 }
 0x300   :  { %1107 = vrcp.f32 %v651_v32 }
 0x306   :  { %v1108_v33 = vpop.eup %1107 }
 0x307   :  { %v698_v34 = vmul.f32 %v1108_v33, %v651_v32  ;;  %v653_v35 = vpop.xlane.xlu0 %652  ;;  %v587_v36 = vpop.xlane.xlu1 %586 }
 0x308   :  { %1109 = vrcp.f32 %v653_v35  ;;  %v610_v37 = vsub.f32 %v1473_v45, %v587_v36 }
 0x309   :  { %v714_v38 = vsub.f32 2.0, %v698_v34 }
 0x30a   :  { %v634_v40 = vmul.f32 1.442695, %v610_v37 }
 0x30b   :  { %v730_v41 = vmul.f32 %v1108_v33, %v714_v38 }
 0x30c   :  { %1111 = vpow2.f32 %v634_v40 }
 0x30d   :  { %v746_v42 = vmul.f32 %v1467_v39, %v730_v41 }
 0x30e   :  { %v1110_v43 = vpop.eup %1109 }
 0x30f   :  { %v699_v44 = vmul.f32 %v1110_v43, %v653_v35  ;;  %v655_v47 = vpop.xlane.xlu2 %654  ;;  %v589_v48 = vpop.xlane.xlu0 %588  ;;  %763 = vst.msk [vmem:[#allocation10] sm:$0xff] %vm762_vm1, %v746_v42  ;;  %858 = vmatmul.f32.vlgmr.msrb.gmra.mxu1 %v746_v42 }
 0x310   :  { %1113 = vrcp.f32 %v655_v47  ;;  %v611_v49 = vsub.f32 %v1482_v52, %v589_v48 }
 0x311   :  { %v715_v50 = vsub.f32 2.0, %v699_v44 }
 0x312   :  { %v1546_v51 = vpop.eup %1111  ;;  %v636_v45 = vmul.f32 1.442695, %v611_v49 }
 0x313   :  { %666 = vadd.xlane.f32.xlu2 %v1546_v51  ;;  %v731_v53 = vmul.f32 %v1110_v43, %v715_v50 }
 0x314   :  { %1115 = vpow2.f32 %v636_v45 }
 0x315   :  { %v747_v39 = vmul.f32 %v1475_v46, %v731_v53  ;;  %v922_v53 = vld [vmem:[%s1699_s3 + $0x78] sm:$0xff] }
 0x316   :  { %v1114_v55 = vpop.eup %1113  ;;  %923 = vmatpush.msrb.mxu2 %v922_v53 }
 0x317   :  { %v700_v56 = vmul.f32 %v1114_v55, %v655_v47  ;;  %v657_v57 = vpop.xlane.xlu1 %656  ;;  %v591_v58 = vpop.xlane.xlu2 %590  ;;  %764 = vst.msk [vmem:[#allocation10 + $0x8] sm:$0xff] %vm762_vm1, %v747_v39  ;;  %861 = vmatmul.f32.gmra.mxu1 %v747_v39 }
 0x318   :  { %1117 = vrcp.f32 %v657_v57  ;;  %v612_v52 = vsub.f32 %v1491_v61, %v591_v58  ;;  %v916_v58 = vld [vmem:[%s1699_s3 + $0x48] sm:$0xff] }
 0x319   :  { %v716_v59 = vsub.f32 2.0, %v700_v56 }
 0x31a   :  { %v1552_v60 = vpop.eup %1115  ;;  %v638_v63 = vmul.f32 1.442695, %v612_v52  ;;  %v915_v52 = vld [vmem:[%s1699_s3 + $0x40] sm:$0xff] }
 0x31b   :  { %668 = vadd.xlane.f32.xlu1 %v1552_v60  ;;  %v732_v0 = vmul.f32 %v1114_v55, %v716_v59  ;;  %v919_v55 = vld [vmem:[%s1699_s3 + $0x60] sm:$0xff]  ;;  %v914_v59 = vld [vmem:[%s1699_s3 + $0x38] sm:$0xff] }
 0x31c   :  { %1119 = vpow2.f32 %v638_v63  ;;  %v913_v63 = vld [vmem:[%s1699_s3 + $0x30] sm:$0xff] }
 0x31d   :  { %v1556_v46 = vmul.f32 %v1484_v54, %v732_v0  ;;  %v912_v0 = vld [vmem:[%s1699_s3 + $0x28] sm:$0xff] }
 0x31e   :  { %v1118_v1 = vpop.eup %1117 }
 0x31f   :  { %v701_v2 = vmul.f32 %v1118_v1, %v657_v57  ;;  %v659_v3 = vpop.xlane.xlu0 %658  ;;  %v593_v5 = vpop.xlane.xlu1 %592  ;;  %864 = vmatmul.f32.gmra.mxu1 %v1556_v46  ;;  %v918_v57 = vld [vmem:[%s1699_s3 + $0x58] sm:$0xff] }
 0x320   :  { %1121 = vrcp.f32 %v659_v3  ;;  %v613_v61 = vsub.f32 %v1500_v4, %v593_v5  ;;  %v907_v5 = vld [vmem:[%s1699_s3] sm:$0xff] }
 0x321   :  { %v717_v7 = vsub.f32 2.0, %v701_v2  ;;  %v909_v2 = vld [vmem:[%s1699_s3 + $0x10] sm:$0xff] }
 0x322   :  { %v1560_v8 = vpop.eup %1119  ;;  %v640_v9 = vmul.f32 1.442695, %v613_v61 }
 0x323   :  { %670 = vadd.xlane.f32.xlu2 %v1560_v8  ;;  %v733_v10 = vmul.f32 %v1118_v1, %v717_v7  ;;  %v911_v1 = vld [vmem:[%s1699_s3 + $0x20] sm:$0xff] }
 0x324   :  { %1123 = vpow2.f32 %v640_v9 }
 0x325   :  { %v1564_v54 = vmul.f32 %v1493_v62, %v733_v10 }
 0x326   :  { %v1122_v11 = vpop.eup %1121 }
 0x327   :  { %v702_v12 = vmul.f32 %v1122_v11, %v659_v3  ;;  %v661_v15 = vpop.xlane.xlu2 %660  ;;  %v595_v16 = vpop.xlane.xlu0 %594  ;;  %867 = vmatmul.f32.gmra.mxu1 %v1564_v54  ;;  %v908_v3 = vld [vmem:[%s1699_s3 + $0x8] sm:$0xff] }
 0x328   :  { %1125 = vrcp.f32 %v661_v15  ;;  %v614_v4 = vsub.f32 %v1511_v13, %v595_v16 }
 0x329   :  { %v718_v17 = vsub.f32 2.0, %v702_v12 }
 0x32a   :  { %v1568_v18 = vpop.eup %1123  ;;  %v642_v20 = vmul.f32 1.442695, %v614_v4 }
 0x32b   :  { %672 = vadd.xlane.f32.xlu0 %v1568_v18  ;;  %v734_v22 = vmul.f32 %v1122_v11, %v718_v17 }
 0x32c   :  { %1127 = vpow2.f32 %v642_v20 }
 0x32d   :  { %v1572_v62 = vmul.f32 %v1503_v6, %v734_v22 }
 0x32e   :  { %v1126_v23 = vpop.eup %1125 }
 0x32f   :  { %v703_v24 = vmul.f32 %v1126_v23, %v661_v15  ;;  %v663_v25 = vpop.xlane.xlu1 %662  ;;  %v597_v26 = vpop.xlane.xlu2 %596  ;;  %870 = vmatmul.f32.gmra.mxu1 %v1572_v62 }
 0x330   :  { %1129 = vrcp.f32 %v663_v25  ;;  %v615_v13 = vsub.f32 %v1520_v19, %v597_v26 }
 0x331   :  { %v719_v29 = vsub.f32 2.0, %v703_v24 }
 0x332   :  { %v1576_v30 = vpop.eup %1127  ;;  %v644_v32 = vmul.f32 1.442695, %v615_v13 }
 0x333   :  { %674 = vadd.xlane.f32.xlu1 %v1576_v30  ;;  %v735_v33 = vmul.f32 %v1126_v23, %v719_v29 }
 0x334   :  { %1131 = vpow2.f32 %v644_v32 }
 0x335   :  { %v751_v6 = vmul.f32 %v1513_v14, %v735_v33 }
 0x336   :  { %v1130_v34 = vpop.eup %1129 }
 0x337   :  { %v704_v35 = vmul.f32 %v1130_v34, %v663_v25  ;;  %v665_v36 = vpop.xlane.xlu0 %664  ;;  %v599_v37 = vpop.xlane.xlu1 %598  ;;  %873 = vmatmul.f32.gmra.mxu1 %v751_v6 }
 0x338   :  { %1133 = vrcp.f32 %v665_v36  ;;  %v616_v38 = vsub.f32 %v1530_v27, %v599_v37 }
 0x339   :  { %v720_v40 = vsub.f32 2.0, %v704_v35 }
 0x33a   :  { %v1581_v19 = vpop.eup %1131  ;;  %v646_v41 = vmul.f32 1.442695, %v616_v38 }
 0x33b   :  { %676 = vadd.xlane.f32.xlu2 %v1581_v19  ;;  %v736_v42 = vmul.f32 %v1130_v34, %v720_v40 }
 0x33c   :  { %1135 = vpow2.f32 %v646_v41 }
 0x33d   :  { %v752_v43 = vmul.f32 %v1523_v21, %v736_v42  ;;  %v921_v21 = vld [vmem:[%s1699_s3 + $0x70] sm:$0xff] }
 0x33e   :  { %v1134_v44 = vpop.eup %1133  ;;  %924 = vmatpush.msrb.mxu2 %v921_v21 }
 0x33f   :  { %v705_v14 = vmul.f32 %v1134_v44, %v665_v36  ;;  %v601_v47 = vpop.xlane.xlu0 %600  ;;  %876 = vmatmul.f32.gmra.mxu1 %v752_v43 }
 0x340   :  { %v617_v48 = vsub.f32 %v1539_v31, %v601_v47  ;;  %v920_v31 = vld [vmem:[%s1699_s3 + $0x68] sm:$0xff] }
 0x341   :  { %v721_v49 = vsub.f32 2.0, %v705_v14  ;;  %925 = vmatpush.msrb.mxu2 %v920_v31 }
 0x342   :  { %v1586_v50 = vpop.eup %1135  ;;  %v648_v27 = vmul.f32 1.442695, %v617_v48 }
 0x343   :  { %678 = vadd.xlane.f32.xlu0 %v1586_v50  ;;  %v737_v45 = vmul.f32 %v1134_v44, %v721_v49  ;;  %926 = vmatpush.msrb.mxu2 %v919_v55 }
 0x344   :  { %1137 = vpow2.f32 %v648_v27 }
 0x345   :  { %v753_v39 = vmul.f32 %v1532_v28, %v737_v45  ;;  %v917_v28 = vld [vmem:[%s1699_s3 + $0x50] sm:$0xff]  ;;  %927 = vmatpush.msrb.mxu2 %v918_v57 }
 0x347   :  { %879 = vmatmul.f32.gmra.mxu1 %v753_v39  ;;  %928 = vmatpush.msrb.mxu2 %v917_v28 }
 0x349   :  { %929 = vmatpush.msrb.mxu2 %v916_v58 }
 0x34a   :  { %v1602_v56 = vpop.eup %1137 }
 0x34b   :  { %680 = vadd.xlane.f32.xlu1 %v1602_v56  ;;  %930 = vmatpush.msrb.mxu2 %v915_v52 }
 0x34d   :  { %931 = vmatpush.msrb.mxu2 %v914_v59 }
 0x34f   :  { %932 = vmatpush.msrb.mxu2 %v913_v63 }
 0x351   :  { %933 = vmatpush.msrb.mxu2 %v912_v0 }
 0x353   :  { %767 = vrot.lane.b32.xlu2 %v1556_v46, %s1290_s27  ;;  %v910_v46 = vld [vmem:[%s1699_s3 + $0x18] sm:$0xff]  ;;  %934 = vmatpush.msrb.mxu2 %v911_v1  ;;  %s1294_s3 = smov 48  }
 0x355   :  { %935 = vmatpush.msrb.mxu2 %v910_v46 }
 0x357   :  { %769 = vrot.lane.b32.xlu0 %v1564_v54, %s1290_s27  ;;  %936 = vmatpush.msrb.mxu2 %v909_v2 }
 0x359   :  { %937 = vmatpush.msrb.mxu2 %v908_v3 }
 0x35b   :  { %780 = vrot.lane.b32.xlu2 %v751_v6, %s1291_s12  ;;  %938 = vmatpush.msrb.mxu2 %v907_v5 }
 0x35f   :  { %789 = vrot.lane.b32.xlu0 %v752_v43, %s1292_s13 }
 0x363   :  { %791 = vrot.lane.b32.xlu2 %v753_v39, %s1292_s13 }
 0x364   :  { %778 = vrot.lane.b32.xlu1 %v1572_v62, %s1291_s12 }
 0x386   :  { %v667_v61 = vpop.xlane.xlu2 %666 }
 0x387   :  { %1139 = vrcp.f32 %v667_v61 }
 0x38c   :  { %v859_v7 = vpop.f32.mrf.mxu1 }
 0x38d   :  { %v1140_v9 = vpop.eup %1139  ;;  %939 = vmatmul.f32.vlgmr.msrb.gmra.mxu2 %v859_v7  ;;  %v1660_v7 = vld [vmem:[#allocation8 + $0x20] sm:$0xff] }
 0x38e   :  { %v706_v10 = vmul.f32 %v1140_v9, %v667_v61  ;;  %v669_v54 = vpop.xlane.xlu1 %668 }
 0x38f   :  { %1141 = vrcp.f32 %v669_v54 }
 0x390   :  { %v722_v11 = vsub.f32 2.0, %v706_v10 }
 0x392   :  { %v738_v12 = vmul.f32 %v1140_v9, %v722_v11 }
 0x394   :  { %v862_v15 = vpop.f32.mrf.mxu1  ;;  %v754_v16 = vmul.f32 %v1546_v51, %v738_v12 }
 0x395   :  { %v1142_v4 = vpop.eup %1141  ;;  %942 = vmatmul.f32.gmra.mxu2 %v862_v15 }
 0x396   :  { %v707_v17 = vmul.f32 %v1142_v4, %v669_v54  ;;  %v671_v20 = vpop.xlane.xlu2 %670  ;;  %800 = vrot.lane.b32.xlu1 %v754_v16, %s1293_s21  ;;  %882 = vmatmul.f32.gmra.mxu1 %v754_v16 }
 0x397   :  { %1143 = vrcp.f32 %v671_v20 }
 0x398   :  { %v723_v22 = vsub.f32 2.0, %v707_v17 }
 0x39a   :  { %v739_v62 = vmul.f32 %v1142_v4, %v723_v22 }
 0x39c   :  { %v865_v23 = vpop.f32.mrf.mxu1  ;;  %v755_v24 = vmul.f32 %v1552_v60, %v739_v62 }
 0x39d   :  { %v1144_v25 = vpop.eup %1143  ;;  %944 = vmatmul.f32.gmra.mxu2 %v865_v23 }
 0x39e   :  { %v708_v26 = vmul.f32 %v1144_v25, %v671_v20  ;;  %802 = vrot.lane.b32.xlu0 %v755_v24, %s1293_s21  ;;  %v673_v13 = vpop.xlane.xlu0 %672  ;;  %885 = vmatmul.f32.gmra.mxu1 %v755_v24 }
 0x39f   :  { %1145 = vrcp.f32 %v673_v13 }
 0x3a0   :  { %v724_v51 = vsub.f32 2.0, %v708_v26 }
 0x3a2   :  { %v740_v29 = vmul.f32 %v1144_v25, %v724_v51 }
 0x3a4   :  { %v868_v32 = vpop.f32.mrf.mxu1  ;;  %v756_v33 = vmul.f32 %v1560_v8, %v740_v29 }
 0x3a5   :  { %v1146_v6 = vpop.eup %1145  ;;  %947 = vmatmul.f32.gmra.mxu2 %v868_v32 }
 0x3a6   :  { %v709_v34 = vmul.f32 %v1146_v6, %v673_v13  ;;  %811 = vrot.lane.b32.xlu2 %v756_v33, %s1294_s3  ;;  %v675_v35 = vpop.xlane.xlu1 %674  ;;  %888 = vmatmul.f32.gmra.mxu1 %v756_v33 }
 0x3a7   :  { %1147 = vrcp.f32 %v675_v35 }
 0x3a8   :  { %v725_v60 = vsub.f32 2.0, %v709_v34 }
 0x3aa   :  { %v741_v36 = vmul.f32 %v1146_v6, %v725_v60 }
 0x3ac   :  { %v871_v37 = vpop.f32.mrf.mxu1  ;;  %v757_v38 = vmul.f32 %v1568_v18, %v741_v36 }
 0x3ad   :  { %v1148_v40 = vpop.eup %1147  ;;  %949 = vmatmul.f32.gmra.mxu2 %v871_v37 }
 0x3ae   :  { %v710_v41 = vmul.f32 %v1148_v40, %v675_v35  ;;  %v677_v42 = vpop.xlane.xlu2 %676  ;;  %813 = vrot.lane.b32.xlu1 %v757_v38, %s1294_s3  ;;  %891 = vmatmul.f32.gmra.mxu1 %v757_v38 }
 0x3af   :  { %1149 = vrcp.f32 %v677_v42 }
 0x3b0   :  { %v726_v8 = vsub.f32 2.0, %v710_v41 }
 0x3b2   :  { %v742_v43 = vmul.f32 %v1148_v40, %v726_v8 }
 0x3b4   :  { %v874_v44 = vpop.f32.mrf.mxu1  ;;  %v758_v14 = vmul.f32 %v1576_v30, %v742_v43 }
 0x3b5   :  { %v1150_v47 = vpop.eup %1149  ;;  %952 = vmatmul.f32.gmra.mxu2 %v874_v44 }
 0x3b6   :  { %v711_v48 = vmul.f32 %v1150_v47, %v677_v42  ;;  %v768_v49 = vpop.permute.xlu2 %767  ;;  %822 = vrot.lane.b32.xlu0 %v758_v14, %s1295_s0  ;;  %v679_v27 = vpop.xlane.xlu0 %678  ;;  %894 = vmatmul.f32.gmra.mxu1 %v758_v14 }
 0x3b7   :  { %774 = vst.msk [vmem:[#allocation10 + $0x10] sm:$0xff] %vm762_vm1, %v768_v49  ;;  %1151 = vrcp.f32 %v679_v27 }
 0x3b8   :  { %v727_v18 = vsub.f32 2.0, %v711_v48 }
 0x3ba   :  { %v743_v45 = vmul.f32 %v1150_v47, %v727_v18 }
 0x3bc   :  { %v877_v53 = vpop.f32.mrf.mxu1  ;;  %v759_v21 = vmul.f32 %v1581_v19, %v743_v45 }
 0x3bd   :  { %v1152_v39 = vpop.eup %1151  ;;  %954 = vmatmul.f32.gmra.mxu2 %v877_v53 }
 0x3be   :  { %v712_v31 = vmul.f32 %v1152_v39, %v679_v27  ;;  %824 = vrot.lane.b32.xlu2 %v759_v21, %s1295_s0  ;;  %v781_v30 = vpop.permute.xlu2 %780  ;;  %v681_v55 = vpop.xlane.xlu1 %680  ;;  %897 = vmatmul.f32.gmra.mxu1 %v759_v21 }
 0x3bf   :  { %786 = vst.msk [vmem:[#allocation10 + $0x28] sm:$0xff] %vm762_vm1, %v781_v30  ;;  %1153 = vrcp.f32 %v681_v55 }
 0x3c0   :  { %v728_v57 = vsub.f32 2.0, %v712_v31 }
 0x3c2   :  { %v744_v28 = vmul.f32 %v1152_v39, %v728_v57 }
 0x3c4   :  { %v880_v58 = vpop.f32.mrf.mxu1  ;;  %v760_v52 = vmul.f32 %v1586_v50, %v744_v28 }
 0x3c5   :  { %v1154_v59 = vpop.eup %1153  ;;  %957 = vmatmul.f32.gmra.mxu2 %v880_v58 }
 0x3c6   :  { %v713_v63 = vmul.f32 %v1154_v59, %v681_v55  ;;  %v792_v0 = vpop.permute.xlu2 %791  ;;  %833 = vrot.lane.b32.xlu1 %v760_v52, %s1296_s22  ;;  %900 = vmatmul.f32.gmra.mxu1 %v760_v52 }
 0x3c7   :  { %797 = vst.msk [vmem:[#allocation10 + $0x38] sm:$0xff] %vm762_vm1, %v792_v0 }
 0x3c8   :  { %v729_v19 = vsub.f32 2.0, %v713_v63 }
 0x3c9   :  { %v770_v1 = vpop.permute.xlu0 %769 }
 0x3ca   :  { %v745_v46 = vmul.f32 %v1154_v59, %v729_v19  ;;  %775 = vst.msk [vmem:[#allocation10 + $0x18] sm:$0xff] %vm762_vm1, %v770_v1 }
 0x3cc   :  { %v761_v2 = vmul.f32 %v1602_v56, %v745_v46 }
 0x3ce   :  { %835 = vrot.lane.b32.xlu0 %v761_v2, %s1296_s22  ;;  %903 = vmatmul.f32.gmra.mxu1 %v761_v2 }
 0x3d1   :  { %v790_v3 = vpop.permute.xlu0 %789 }
 0x3d2   :  { %796 = vst.msk [vmem:[#allocation10 + $0x30] sm:$0xff] %vm762_vm1, %v790_v3 }
 0x3d6   :  { %v779_v50 = vpop.permute.xlu1 %778 }
 0x3d7   :  { %785 = vst.msk [vmem:[#allocation10 + $0x20] sm:$0xff] %vm762_vm1, %v779_v50 }
 0x400   :  { %v812_v5 = vpop.permute.xlu2 %811 }
 0x401   :  { %818 = vst.msk [vmem:[#allocation10 + $0x50] sm:$0xff] %vm762_vm1, %v812_v5 }
 0x408   :  { %v801_v61 = vpop.permute.xlu1 %800 }
 0x409   :  { %807 = vst.msk [vmem:[#allocation10 + $0x40] sm:$0xff] %vm762_vm1, %v801_v61 }
 0x410   :  { %v803_v9 = vpop.permute.xlu0 %802  ;;  %v940_v10 = vpop.f32.mrf.mxu2 }
 0x411   :  { %808 = vst.msk [vmem:[#allocation10 + $0x48] sm:$0xff] %vm762_vm1, %v803_v9  ;;  %v980_v56 = vadd.f32 %v940_v10, %v1660_v7 }
 0x413   :  { %989 = vst.msk [vmem:[#allocation9] sm:$0xff] %vm988_vm2, %v980_v56  ;;  %v883_v54 = vpop.f32.mrf.mxu1 }
 0x414   :  { %959 = vmatmul.f32.gmra.mxu2 %v883_v54 }
 0x418   :  { %v825_v11 = vpop.permute.xlu2 %824  ;;  %v943_v12 = vpop.f32.mrf.mxu2 }
 0x419   :  { %830 = vst.msk [vmem:[#allocation10 + $0x68] sm:$0xff] %vm762_vm1, %v825_v11 }
 0x41b   :  { %v886_v15 = vpop.f32.mrf.mxu1 }
 0x41c   :  { %962 = vmatmul.f32.gmra.mxu2 %v886_v15 }
 0x420   :  { %v814_v16 = vpop.permute.xlu1 %813  ;;  %v945_v4 = vpop.f32.mrf.mxu2 }
 0x421   :  { %819 = vst.msk [vmem:[#allocation10 + $0x58] sm:$0xff] %vm762_vm1, %v814_v16  ;;  %v981_v17 = vadd.f32 %v945_v4, %v1660_v7 }
 0x423   :  { %990 = vst.msk [vmem:[#allocation9 + $0x8] sm:$0xff] %vm988_vm2, %v981_v17  ;;  %v889_v20 = vpop.f32.mrf.mxu1 }
 0x424   :  { %964 = vmatmul.f32.gmra.mxu2 %v889_v20 }
 0x428   :  { %v823_v22 = vpop.permute.xlu0 %822  ;;  %v948_v62 = vpop.f32.mrf.mxu2 }
 0x429   :  { %829 = vst.msk [vmem:[#allocation10 + $0x60] sm:$0xff] %vm762_vm1, %v823_v22 }
 0x42b   :  { %v892_v23 = vpop.f32.mrf.mxu1 }
 0x42c   :  { %967 = vmatmul.f32.gmra.mxu2 %v892_v23 }
 0x430   :  { %v950_v24 = vpop.f32.mrf.mxu2 }
 0x431   :  { %v982_v25 = vadd.f32 %v950_v24, %v1660_v7 }
 0x433   :  { %991 = vst.msk [vmem:[#allocation9 + $0x10] sm:$0xff] %vm988_vm2, %v982_v25  ;;  %v895_v26 = vpop.f32.mrf.mxu1 }
 0x434   :  { %969 = vmatmul.f32.gmra.mxu2 %v895_v26 }
 0x438   :  { %v834_v13 = vpop.permute.xlu1 %833  ;;  %v953_v51 = vpop.f32.mrf.mxu2 }
 0x439   :  { %840 = vst.msk [vmem:[#allocation10 + $0x70] sm:$0xff] %vm762_vm1, %v834_v13 }
 0x43b   :  { %v898_v29 = vpop.f32.mrf.mxu1 }
 0x43c   :  { %972 = vmatmul.f32.gmra.mxu2 %v898_v29 }
 0x440   :  { %v836_v32 = vpop.permute.xlu0 %835  ;;  %v955_v33 = vpop.f32.mrf.mxu2 }
 0x441   :  { %841 = vst.msk [vmem:[#allocation10 + $0x78] sm:$0xff] %vm762_vm1, %v836_v32  ;;  %v983_v6 = vadd.f32 %v955_v33, %v1660_v7 }
 0x442   :  { %1022 = dma.vmem_to_hbm [thread:$0]  %s1015_s1, 2048, %s1017_s25, [#allocation11], %s1287_s17, %s1287_s17, %s1288_s18  }
 0x443   :  { %992 = vst.msk [vmem:[#allocation9 + $0x18] sm:$0xff] %vm988_vm2, %v983_v6  ;;  %v901_v34 = vpop.f32.mrf.mxu1 }
 0x444   :  { %974 = vmatmul.f32.gmra.mxu2 %v901_v34 }
 0x448   :  { %v958_v35 = vpop.f32.mrf.mxu2 }
 0x44b   :  { %v904_v60 = vpop.f32.mrf.mxu1 }
 0x44c   :  { %977 = vmatmul.f32.gmra.mxu2 %v904_v60 }
 0x497   :  { %v960_v36 = vpop.f32.mrf.mxu2 }
 0x498   :  { %v984_v37 = vadd.f32 %v960_v36, %v1660_v7 }
 0x49a   :  { %993 = vst.msk [vmem:[#allocation9 + $0x20] sm:$0xff] %vm988_vm2, %v984_v37 }
 0x49f   :  { %v963_v38 = vpop.f32.mrf.mxu2 }
 0x4a7   :  { %v965_v40 = vpop.f32.mrf.mxu2 }
 0x4a8   :  { %v985_v41 = vadd.f32 %v965_v40, %v1660_v7 }
 0x4aa   :  { %994 = vst.msk [vmem:[#allocation9 + $0x28] sm:$0xff] %vm988_vm2, %v985_v41 }
 0x4af   :  { %v968_v42 = vpop.f32.mrf.mxu2 }
 0x4b7   :  { %v970_v8 = vpop.f32.mrf.mxu2 }
 0x4b8   :  { %v986_v43 = vadd.f32 %v970_v8, %v1660_v7 }
 0x4ba   :  { %995 = vst.msk [vmem:[#allocation9 + $0x30] sm:$0xff] %vm988_vm2, %v986_v43 }
 0x4bf   :  { %v973_v44 = vpop.f32.mrf.mxu2 }
 0x4c7   :  { %v975_v14 = vpop.f32.mrf.mxu2 }
 0x4c8   :  { %v987_v47 = vadd.f32 %v975_v14, %v1660_v7 }
 0x4ca   :  { %996 = vst.msk [vmem:[#allocation9 + $0x38] sm:$0xff] %vm988_vm2, %v987_v47 }
 0x4cb   :  { %1009 = dma.vmem_to_hbm [thread:$0]  %s1002_s26, 1024, %s1004_s28, [#allocation5], %s1287_s17, %s1287_s17, %s1288_s18  }
 0x4cf   :  { %v978_v48 = vpop.f32.mrf.mxu2 }
 0x4d0   :  { %1279 = dma.done.wait [#allocation5], 1024  }
 0x4d1   :  { %1280 = vsyncadd [#allocation5], 4294966272 }
 0x4d2   :  { %1281 = dma.done.wait [#allocation11], 2048  }
 0x4d3   :  { %1282 = vsyncadd [#allocation11], 4294965248 }
 0x4d4   :  { %1031 = vsyncpa [#allocation4], 1 }
 0x4d5   :  { %1032 = vsyncpa [#allocation7], 1 }
 0x4d6   :  { %1033 = vsyncpa [#allocation5], 1 }
 0x4d7   :  { %1034 = vsyncpa [#allocation11], 1 }

</bundles_post_ra>
